<compile_context>
chip_gen: v6e
topology: v6e:2x2x1
jax: 0.10.0
libtpu: 0.0.40
codegen_flags: <defaults>
</compile_context>

<pallas_src>
import math

import jax
import jax.numpy as jnp
from jax import lax
from jax.experimental import pallas as pl
from jax.experimental.pallas import tpu as pltpu

# ---- small synthetic config ----
B = 2           # batch
S = 8           # sequence length
HID = 32        # hidden_size
NH = 4          # num_attention_heads
DH = HID // NH  # attention_head_size
INTER = 64      # intermediate_size
EPS = 1e-12     # layer_norm_eps
NUM_DIST_VALS = 256.0          # config.quantize['num_dist_vals']
HALF_VALS = 0.5 * NUM_DIST_VALS    # 128.0
INV_HALF_VALS = 1.0 / HALF_VALS    # exact power of two


# ---------------- in-kernel helpers (vector ops only, (1,1) "scalars") ----------------
def _act_quant_int(x):
    """Whole-tensor abs-max quantization in the integer domain.

    Returns (round(x*scale) as f32 integers in [-128, 128], 1/scale as (1,1)).
    1/scale = alpha * 2^-7 is exact, so no divide is needed for dequant.
    """
    alpha = jnp.maximum(jnp.max(jnp.abs(x), keepdims=True), 1e-20)   # (1, 1)
    scale = HALF_VALS / alpha                                        # (1, 1)
    return jnp.round(x * scale), alpha * INV_HALF_VALS


def _layernorm(x, gamma, beta):
    mu = jnp.mean(x, axis=-1, keepdims=True)
    var = jnp.mean(jnp.square(x - mu), axis=-1, keepdims=True)
    return (x - mu) * lax.rsqrt(var + EPS) * gamma + beta


def _softmax_rows(x):
    m = jnp.max(x, axis=-1, keepdims=True)
    e = jnp.exp(x - m)
    return e * (1.0 / jnp.sum(e, axis=-1, keepdims=True))


def _gelu_exact(x):
    return 0.5 * x * (1.0 + lax.erf(x * (1.0 / math.sqrt(2.0))))


# ---------------- the Pallas kernel (whole encoder layer, single invocation) ----------------
def encoder_layer_kernel(x_ref, mask_ref,
                         ln1g_ref, ln1b_ref,
                         wqkv_ref, qkvscale_ref, bqkv_ref,
                         wd_ref, bd_ref,
                         ln2g_ref, ln2b_ref,
                         w1_ref, b1_ref, w2_ref, b2_ref,
                         wsc_ref,
                         out_ref,
                         probs_scr, ctx_scr):
    x = x_ref[...]                              # (B*S, H) f32
    mask = mask_ref[...]                        # (B, S)  f32

    # ---------- Attention: pre-LayerNorm + fused quantized QKV (bf16 int MXU) ----------
    ln1 = _layernorm(x, ln1g_ref[...], ln1b_ref[...])
    a_int, a_inv = _act_quant_int(ln1)
    qkv = jnp.dot(a_int.astype(jnp.bfloat16), wqkv_ref[...],
                  preferred_element_type=jnp.float32)                 # (B*S, 3H), exact ints
    qkv = qkv * (a_inv * qkvscale_ref[...]) + bqkv_ref[...]           # per-column dequant + bias
    q = qkv[:, 0 * HID:1 * HID]
    k = qkv[:, 1 * HID:2 * HID]
    v = qkv[:, 2 * HID:3 * HID]

    # whole-tensor quantization of q/k/v (one scale across batches & heads, as in torch)
    q_int, q_inv = _act_quant_int(q)
    k_int, k_inv = _act_quant_int(k)
    v_int, v_inv = _act_quant_int(v)

    add_mask = -1000.0 * (1.0 - mask)                                 # (B, S), key axis
    score_rescale = q_inv * k_inv * (1.0 / math.sqrt(DH))             # (1, 1)

    # per-(batch, head) integer score matmuls + softmax, written into scratch
    for b in range(B):
        mb = add_mask[b:b + 1, :]                                     # (1, S)
        for h in range(NH):
            qbh = q_int[b * S:(b + 1) * S, h * DH:(h + 1) * DH]       # (S, DH) ints (f32)
            kbh = k_int[b * S:(b + 1) * S, h * DH:(h + 1) * DH]
            s_int = jnp.dot(qbh, kbh.T, preferred_element_type=jnp.float32)
            s = s_int * score_rescale + mb
            probs_scr[(b * NH + h) * S:(b * NH + h + 1) * S, :] = _softmax_rows(s)

    # quantize all attention probs at once (single global scale, single broadcast)
    p_int, p_inv = _act_quant_int(probs_scr[...])                     # (B*NH*S, S)

    # context: integer prob @ value matmuls, raw integer results into scratch
    for b in range(B):
        for h in range(NH):
            pbh = p_int[(b * NH + h) * S:(b * NH + h + 1) * S, :]     # (S, S)
            vbh = v_int[b * S:(b + 1) * S, h * DH:(h + 1) * DH]       # (S, DH)
            ctx_scr[b * S:(b + 1) * S, h * DH:(h + 1) * DH] = jnp.dot(
                pbh, vbh, preferred_element_type=jnp.float32)

    ctx = ctx_scr[...] * (p_inv * v_inv)                              # dequantized (B*S, H)

    # output projection (bf16 int MXU) + residual (dropout = identity)
    c_int, c_inv = _act_quant_int(ctx)
    attn_dense = jnp.dot(c_int.astype(jnp.bfloat16), wd_ref[...],
                         preferred_element_type=jnp.float32)
    attn_out = attn_dense * (c_inv * wsc_ref[0]) + bd_ref[...] + x

    # ---------- FFN: LayerNorm -> QuantLinear -> GELU -> QuantLinear ----------
    ln2 = _layernorm(attn_out, ln2g_ref[...], ln2b_ref[...])
    f_int, f_inv = _act_quant_int(ln2)
    h1 = jnp.dot(f_int.astype(jnp.bfloat16), w1_ref[...],
                 preferred_element_type=jnp.float32)
    h1 = h1 * (f_inv * wsc_ref[1]) + b1_ref[...]
    g = _gelu_exact(h1)
    g_int, g_inv = _act_quant_int(g)
    h2 = jnp.dot(g_int.astype(jnp.bfloat16), w2_ref[...],
                 preferred_element_type=jnp.float32)
    h2 = h2 * (g_inv * wsc_ref[2]) + b2_ref[...]

    out_ref[...] = (h2 + attn_out).astype(out_ref.dtype)


# ---------------- wrapper ----------------
def _weight_quant_int(w):
    """Pre-quantize a weight: round(w*s_w) as bf16 (exact, |.| <= 128) + 1/s_w."""
    alpha = jnp.maximum(jnp.max(jnp.abs(w)), 1e-20)
    scale = HALF_VALS / alpha
    return (jnp.round(w * scale).astype(jnp.bfloat16),
            (alpha * INV_HALF_VALS).astype(jnp.float32))


def encoder_layer_pallas(hidden, mask, params):
    Bb, Ss, Hh = hidden.shape
    x2 = hidden.reshape(Bb * Ss, Hh)

    # weight quantization is activation-independent: done once here, not in-kernel
    wq_i, wq_s = _weight_quant_int(params["wq"].T)
    wk_i, wk_s = _weight_quant_int(params["wk"].T)
    wv_i, wv_s = _weight_quant_int(params["wv"].T)
    wd_i, wd_s = _weight_quant_int(params["wd"].T)
    w1_i, w1_s = _weight_quant_int(params["w1"].T)
    w2_i, w2_s = _weight_quant_int(params["w2"].T)

    ones_h = jnp.ones((1, Hh), jnp.float32)
    wqkv = jnp.concatenate([wq_i, wk_i, wv_i], axis=1)                       # (H, 3H) bf16 ints
    qkv_colscale = jnp.concatenate([ones_h * wq_s, ones_h * wk_s, ones_h * wv_s],
                                   axis=1)                                   # (1, 3H) f32
    bqkv = jnp.concatenate([params["bq"], params["bk"], params["bv"]])[None, :]
    wscales = jnp.stack([wd_s, w1_s, w2_s])                                  # (3,) f32 -> SMEM

    inputs = [
        x2, mask,
        params["ln1_g"][None, :], params["ln1_b"][None, :],
        wqkv, qkv_colscale, bqkv,
        wd_i, params["bd"][None, :],
        params["ln2_g"][None, :], params["ln2_b"][None, :],
        w1_i, params["b1"][None, :],
        w2_i, params["b2"][None, :],
        wscales,
    ]
    vmem = pl.BlockSpec(memory_space=pltpu.MemorySpace.VMEM)
    smem = pl.BlockSpec(memory_space=pltpu.MemorySpace.SMEM)

    out2 = pl.pallas_call(
        encoder_layer_kernel,
        out_shape=jax.ShapeDtypeStruct((Bb * Ss, Hh), jnp.float32),
        in_specs=[vmem] * (len(inputs) - 1) + [smem],
        out_specs=vmem,
        scratch_shapes=[
            pltpu.VMEM((Bb * NH * Ss, Ss), jnp.float32),   # all (batch, head) attention probs
            pltpu.VMEM((Bb * Ss, Hh), jnp.float32),        # assembled context
        ],
    )(*inputs)
    return out2.reshape(Bb, Ss, Hh)


# ---------------- pure-JAX reference (mirrors the torch forward) ----------------
def _ref_quantize(a):
    alpha = jnp.maximum(jnp.max(jnp.abs(a)), 1e-20)
    scale = 0.5 * NUM_DIST_VALS / alpha
    return jnp.round(a * scale) / scale


def _ref_qmm(a, b):
    return jnp.matmul(_ref_quantize(a), _ref_quantize(b))


def _ref_layernorm(a, g, b):
    mu = a.mean(-1, keepdims=True)
    var = ((a - mu) ** 2).mean(-1, keepdims=True)
    return (a - mu) / jnp.sqrt(var + EPS) * g + b


def encoder_layer_reference(hidden, mask, params):
    def lin(x, w, b):
        return _ref_qmm(x, w.T) + b

    ln1 = _ref_layernorm(hidden, params["ln1_g"], params["ln1_b"])
    q = lin(ln1, params["wq"], params["bq"])
    k = lin(ln1, params["wk"], params["bk"])
    v = lin(ln1, params["wv"], params["bv"])

    def split_heads(t):
        return t.reshape(B, S, NH, DH).transpose(0, 2, 1, 3)

    qh, kh, vh = split_heads(q), split_heads(k), split_heads(v)
    am = -1000.0 * (1.0 - mask)[:, None, None, :]
    scores = _ref_qmm(qh, kh.transpose(0, 1, 3, 2)) / math.sqrt(DH) + am
    probs = jax.nn.softmax(scores, axis=-1)
    ctx = _ref_qmm(probs, vh)
    ctx = ctx.transpose(0, 2, 1, 3).reshape(B, S, HID)
    attn = lin(ctx, params["wd"], params["bd"])
    attn_out = attn + hidden

    ln2 = _ref_layernorm(attn_out, params["ln2_g"], params["ln2_b"])
    h1 = lin(ln2, params["w1"], params["b1"])
    g = 0.5 * h1 * (1.0 + jax.scipy.special.erf(h1 / math.sqrt(2.0)))
    h2 = lin(g, params["w2"], params["b2"])
    return h2 + attn_out


if __name__ == "__main__":
    key = jax.random.PRNGKey(0)
    ks = jax.random.split(key, 14)

    def w(k, shape, s=0.08):
        return (s * jax.random.normal(k, shape)).astype(jnp.float32)

    params = {
        "ln1_g": jnp.ones((HID,), jnp.float32),
        "ln1_b": jnp.zeros((HID,), jnp.float32),
        "wq": w(ks[0], (HID, HID)), "bq": w(ks[1], (HID,)),
        "wk": w(ks[2], (HID, HID)), "bk": w(ks[3], (HID,)),
        "wv": w(ks[4], (HID, HID)), "bv": w(ks[5], (HID,)),
        "wd": w(ks[6], (HID, HID)), "bd": w(ks[7], (HID,)),
        "ln2_g": jnp.ones((HID,), jnp.float32),
        "ln2_b": jnp.zeros((HID,), jnp.float32),
        "w1": w(ks[8], (INTER, HID)), "b1": w(ks[9], (INTER,)),
        "w2": w(ks[10], (HID, INTER)), "b2": w(ks[11], (HID,)),
    }

    hidden = jax.random.normal(ks[12], (B, S, HID), dtype=jnp.float32)
    mask = jnp.ones((B, S), jnp.float32).at[1, 6:].set(0.0)  # pad last 2 tokens of batch 1

    out = jax.block_until_ready(encoder_layer_pallas(hidden, mask, params))
    ref = encoder_layer_reference(hidden, mask, params)

    assert out.shape == (B, S, HID)
    assert bool(jnp.all(jnp.isfinite(out)))
    max_diff = float(jnp.max(jnp.abs(out - ref)))
    assert max_diff < 3e-2, max_diff
    print("KERNEL_OK")
</pallas_src>

<mosaic_0001>
module attributes {stable_mosaic.version = 11 : i64} {
  func.func @encoder_layer_kernel(%arg0: memref<16x32xf32, #tpu.memory_space<vmem>>, %arg1: memref<2x8xf32, #tpu.memory_space<vmem>>, %arg2: memref<1x32xf32, #tpu.memory_space<vmem>>, %arg3: memref<1x32xf32, #tpu.memory_space<vmem>>, %arg4: memref<32x96xbf16, #tpu.memory_space<vmem>>, %arg5: memref<1x96xf32, #tpu.memory_space<vmem>>, %arg6: memref<1x96xf32, #tpu.memory_space<vmem>>, %arg7: memref<32x32xbf16, #tpu.memory_space<vmem>>, %arg8: memref<1x32xf32, #tpu.memory_space<vmem>>, %arg9: memref<1x32xf32, #tpu.memory_space<vmem>>, %arg10: memref<1x32xf32, #tpu.memory_space<vmem>>, %arg11: memref<32x64xbf16, #tpu.memory_space<vmem>>, %arg12: memref<1x64xf32, #tpu.memory_space<vmem>>, %arg13: memref<64x32xbf16, #tpu.memory_space<vmem>>, %arg14: memref<1x32xf32, #tpu.memory_space<vmem>>, %arg15: memref<3xf32, #tpu.memory_space<smem>>, %arg16: memref<16x32xf32, #tpu.memory_space<vmem>>, %arg17: memref<64x8xf32, #tpu.memory_space<vmem>>, %arg18: memref<16x32xf32, #tpu.memory_space<vmem>>) attributes {dimension_semantics = [], scalar_prefetch = 0 : i64, scratch_operands = 2 : i64, tpu.core_type = #tpu.core_type<tc>} {
    %c0 = arith.constant 0 : index
    %c0_0 = arith.constant 0 : index
    %0 = vector.load %arg0[%c0, %c0_0] : memref<16x32xf32, #tpu.memory_space<vmem>>, vector<16x32xf32>
    %c0_1 = arith.constant 0 : index
    %c0_2 = arith.constant 0 : index
    %1 = vector.load %arg1[%c0_1, %c0_2] : memref<2x8xf32, #tpu.memory_space<vmem>>, vector<2x8xf32>
    %c0_3 = arith.constant 0 : index
    %c0_4 = arith.constant 0 : index
    %2 = vector.load %arg2[%c0_3, %c0_4] : memref<1x32xf32, #tpu.memory_space<vmem>>, vector<1x32xf32>
    %c0_5 = arith.constant 0 : index
    %c0_6 = arith.constant 0 : index
    %3 = vector.load %arg3[%c0_5, %c0_6] : memref<1x32xf32, #tpu.memory_space<vmem>>, vector<1x32xf32>
    %cst = arith.constant dense<0.000000e+00> : vector<16xf32>
    %4 = vector.multi_reduction <add>, %0, %cst [1] : vector<16x32xf32> to vector<16xf32>
    %5 = vector.shape_cast %4 : vector<16xf32> to vector<16x1xf32>
    %cst_7 = arith.constant 3.200000e+01 : f32
    %6 = vector.broadcast %cst_7 : f32 to vector<16x1xf32>
    %7 = arith.divf %5, %6 : vector<16x1xf32>
    %8 = vector.broadcast %7 : vector<16x1xf32> to vector<16x32xf32>
    %9 = arith.subf %0, %8 : vector<16x32xf32>
    %10 = arith.mulf %9, %9 : vector<16x32xf32>
    %cst_8 = arith.constant dense<0.000000e+00> : vector<16xf32>
    %11 = vector.multi_reduction <add>, %10, %cst_8 [1] : vector<16x32xf32> to vector<16xf32>
    %12 = vector.shape_cast %11 : vector<16xf32> to vector<16x1xf32>
    %cst_9 = arith.constant 3.200000e+01 : f32
    %13 = vector.broadcast %cst_9 : f32 to vector<16x1xf32>
    %14 = arith.divf %12, %13 : vector<16x1xf32>
    %15 = vector.broadcast %7 : vector<16x1xf32> to vector<16x32xf32>
    %16 = arith.subf %0, %15 : vector<16x32xf32>
    %cst_10 = arith.constant 9.99999996E-13 : f32
    %17 = vector.broadcast %cst_10 : f32 to vector<16x1xf32>
    %18 = arith.addf %14, %17 : vector<16x1xf32>
    %19 = math.rsqrt %18 : vector<16x1xf32>
    %20 = vector.broadcast %19 : vector<16x1xf32> to vector<16x32xf32>
    %21 = arith.mulf %16, %20 : vector<16x32xf32>
    %22 = vector.broadcast %2 : vector<1x32xf32> to vector<16x32xf32>
    %23 = arith.mulf %21, %22 : vector<16x32xf32>
    %24 = vector.broadcast %3 : vector<1x32xf32> to vector<16x32xf32>
    %25 = arith.addf %23, %24 : vector<16x32xf32>
    %26 = math.absf %25 : vector<16x32xf32>
    %27 = vector.shape_cast %26 : vector<16x32xf32> to vector<1x16x32xf32>
    %cst_11 = arith.constant dense<0xFF800000> : vector<1xf32>
    %28 = vector.multi_reduction <maximumf>, %27, %cst_11 [1, 2] : vector<1x16x32xf32> to vector<1xf32>
    %29 = vector.shape_cast %28 : vector<1xf32> to vector<1x1x1xf32>
    %30 = vector.extract %29[0, 0, 0] : f32 from vector<1x1x1xf32>
    %31 = vector.broadcast %30 : f32 to vector<1x1xf32>
    %cst_12 = arith.constant 9.99999968E-21 : f32
    %32 = vector.broadcast %cst_12 : f32 to vector<1x1xf32>
    %33 = arith.maximumf %31, %32 : vector<1x1xf32>
    %cst_13 = arith.constant 1.280000e+02 : f32
    %34 = vector.broadcast %cst_13 : f32 to vector<1x1xf32>
    %35 = arith.divf %34, %33 : vector<1x1xf32>
    %36 = vector.broadcast %35 : vector<1x1xf32> to vector<16x32xf32>
    %37 = arith.mulf %25, %36 : vector<16x32xf32>
    %38 = math.roundeven %37 : vector<16x32xf32>
    %cst_14 = arith.constant 7.812500e-03 : f32
    %39 = vector.broadcast %cst_14 : f32 to vector<1x1xf32>
    %40 = arith.mulf %33, %39 : vector<1x1xf32>
    %41 = arith.truncf %38 : vector<16x32xf32> to vector<16x32xbf16>
    %c0_15 = arith.constant 0 : index
    %c0_16 = arith.constant 0 : index
    %42 = vector.load %arg4[%c0_15, %c0_16] : memref<32x96xbf16, #tpu.memory_space<vmem>>, vector<32x96xbf16>
    %cst_17 = arith.constant dense<0.000000e+00> : vector<16x96xf32>
    %43 = tpu.matmul %41, %42, %cst_17 {dimension_numbers = #tpu.dot_dimension_numbers<[1], [0], [0], [1], [0, 0, 1, 1], [], []>} : vector<16x32xbf16>, vector<32x96xbf16>, vector<16x96xf32> -> vector<16x96xf32>
    %c0_18 = arith.constant 0 : index
    %c0_19 = arith.constant 0 : index
    %44 = vector.load %arg5[%c0_18, %c0_19] : memref<1x96xf32, #tpu.memory_space<vmem>>, vector<1x96xf32>
    %45 = vector.broadcast %40 : vector<1x1xf32> to vector<1x96xf32>
    %46 = arith.mulf %45, %44 : vector<1x96xf32>
    %47 = vector.broadcast %46 : vector<1x96xf32> to vector<16x96xf32>
    %48 = arith.mulf %43, %47 : vector<16x96xf32>
    %c0_20 = arith.constant 0 : index
    %c0_21 = arith.constant 0 : index
    %49 = vector.load %arg6[%c0_20, %c0_21] : memref<1x96xf32, #tpu.memory_space<vmem>>, vector<1x96xf32>
    %50 = vector.broadcast %49 : vector<1x96xf32> to vector<16x96xf32>
    %51 = arith.addf %48, %50 : vector<16x96xf32>
    %52 = vector.extract_strided_slice %51 {offsets = [0, 0], sizes = [16, 32], strides = [1, 1]} : vector<16x96xf32> to vector<16x32xf32>
    %53 = vector.extract_strided_slice %51 {offsets = [0, 32], sizes = [16, 32], strides = [1, 1]} : vector<16x96xf32> to vector<16x32xf32>
    %54 = vector.extract_strided_slice %51 {offsets = [0, 64], sizes = [16, 32], strides = [1, 1]} : vector<16x96xf32> to vector<16x32xf32>
    %55 = math.absf %52 : vector<16x32xf32>
    %56 = vector.shape_cast %55 : vector<16x32xf32> to vector<1x16x32xf32>
    %cst_22 = arith.constant dense<0xFF800000> : vector<1xf32>
    %57 = vector.multi_reduction <maximumf>, %56, %cst_22 [1, 2] : vector<1x16x32xf32> to vector<1xf32>
    %58 = vector.shape_cast %57 : vector<1xf32> to vector<1x1x1xf32>
    %59 = vector.extract %58[0, 0, 0] : f32 from vector<1x1x1xf32>
    %60 = vector.broadcast %59 : f32 to vector<1x1xf32>
    %cst_23 = arith.constant 9.99999968E-21 : f32
    %61 = vector.broadcast %cst_23 : f32 to vector<1x1xf32>
    %62 = arith.maximumf %60, %61 : vector<1x1xf32>
    %cst_24 = arith.constant 1.280000e+02 : f32
    %63 = vector.broadcast %cst_24 : f32 to vector<1x1xf32>
    %64 = arith.divf %63, %62 : vector<1x1xf32>
    %65 = vector.broadcast %64 : vector<1x1xf32> to vector<16x32xf32>
    %66 = arith.mulf %52, %65 : vector<16x32xf32>
    %67 = math.roundeven %66 : vector<16x32xf32>
    %cst_25 = arith.constant 7.812500e-03 : f32
    %68 = vector.broadcast %cst_25 : f32 to vector<1x1xf32>
    %69 = arith.mulf %62, %68 : vector<1x1xf32>
    %70 = math.absf %53 : vector<16x32xf32>
    %71 = vector.shape_cast %70 : vector<16x32xf32> to vector<1x16x32xf32>
    %cst_26 = arith.constant dense<0xFF800000> : vector<1xf32>
    %72 = vector.multi_reduction <maximumf>, %71, %cst_26 [1, 2] : vector<1x16x32xf32> to vector<1xf32>
    %73 = vector.shape_cast %72 : vector<1xf32> to vector<1x1x1xf32>
    %74 = vector.extract %73[0, 0, 0] : f32 from vector<1x1x1xf32>
    %75 = vector.broadcast %74 : f32 to vector<1x1xf32>
    %cst_27 = arith.constant 9.99999968E-21 : f32
    %76 = vector.broadcast %cst_27 : f32 to vector<1x1xf32>
    %77 = arith.maximumf %75, %76 : vector<1x1xf32>
    %cst_28 = arith.constant 1.280000e+02 : f32
    %78 = vector.broadcast %cst_28 : f32 to vector<1x1xf32>
    %79 = arith.divf %78, %77 : vector<1x1xf32>
    %80 = vector.broadcast %79 : vector<1x1xf32> to vector<16x32xf32>
    %81 = arith.mulf %53, %80 : vector<16x32xf32>
    %82 = math.roundeven %81 : vector<16x32xf32>
    %cst_29 = arith.constant 7.812500e-03 : f32
    %83 = vector.broadcast %cst_29 : f32 to vector<1x1xf32>
    %84 = arith.mulf %77, %83 : vector<1x1xf32>
    %85 = math.absf %54 : vector<16x32xf32>
    %86 = vector.shape_cast %85 : vector<16x32xf32> to vector<1x16x32xf32>
    %cst_30 = arith.constant dense<0xFF800000> : vector<1xf32>
    %87 = vector.multi_reduction <maximumf>, %86, %cst_30 [1, 2] : vector<1x16x32xf32> to vector<1xf32>
    %88 = vector.shape_cast %87 : vector<1xf32> to vector<1x1x1xf32>
    %89 = vector.extract %88[0, 0, 0] : f32 from vector<1x1x1xf32>
    %90 = vector.broadcast %89 : f32 to vector<1x1xf32>
    %cst_31 = arith.constant 9.99999968E-21 : f32
    %91 = vector.broadcast %cst_31 : f32 to vector<1x1xf32>
    %92 = arith.maximumf %90, %91 : vector<1x1xf32>
    %cst_32 = arith.constant 1.280000e+02 : f32
    %93 = vector.broadcast %cst_32 : f32 to vector<1x1xf32>
    %94 = arith.divf %93, %92 : vector<1x1xf32>
    %95 = vector.broadcast %94 : vector<1x1xf32> to vector<16x32xf32>
    %96 = arith.mulf %54, %95 : vector<16x32xf32>
    %97 = math.roundeven %96 : vector<16x32xf32>
    %cst_33 = arith.constant 7.812500e-03 : f32
    %98 = vector.broadcast %cst_33 : f32 to vector<1x1xf32>
    %99 = arith.mulf %92, %98 : vector<1x1xf32>
    %cst_34 = arith.constant 1.000000e+00 : f32
    %100 = vector.broadcast %cst_34 : f32 to vector<2x8xf32>
    %101 = arith.subf %100, %1 : vector<2x8xf32>
    %cst_35 = arith.constant -1.000000e+03 : f32
    %102 = vector.broadcast %cst_35 : f32 to vector<2x8xf32>
    %103 = arith.mulf %102, %101 : vector<2x8xf32>
    %104 = arith.mulf %69, %84 : vector<1x1xf32>
    %cst_36 = arith.constant 0.353553385 : f32
    %105 = vector.broadcast %cst_36 : f32 to vector<1x1xf32>
    %106 = arith.mulf %104, %105 : vector<1x1xf32>
    %107 = vector.extract_strided_slice %103 {offsets = [0, 0], sizes = [1, 8], strides = [1, 1]} : vector<2x8xf32> to vector<1x8xf32>
    %108 = vector.extract_strided_slice %67 {offsets = [0, 0], sizes = [8, 8], strides = [1, 1]} : vector<16x32xf32> to vector<8x8xf32>
    %109 = vector.extract_strided_slice %82 {offsets = [0, 0], sizes = [8, 8], strides = [1, 1]} : vector<16x32xf32> to vector<8x8xf32>
    %110 = tpu.transpose %109, [1, 0] : vector<8x8xf32> -> vector<8x8xf32>
    %cst_37 = arith.constant dense<0.000000e+00> : vector<8x8xf32>
    %111 = tpu.matmul %108, %110, %cst_37 {dimension_numbers = #tpu.dot_dimension_numbers<[1], [0], [0], [1], [0, 0, 1, 1], [], []>} : vector<8x8xf32>, vector<8x8xf32>, vector<8x8xf32> -> vector<8x8xf32>
    %112 = vector.broadcast %106 : vector<1x1xf32> to vector<8x8xf32>
    %113 = arith.mulf %111, %112 : vector<8x8xf32>
    %114 = vector.broadcast %107 : vector<1x8xf32> to vector<8x8xf32>
    %115 = arith.addf %113, %114 : vector<8x8xf32>
    %cst_38 = arith.constant dense<0xFF800000> : vector<8xf32>
    %116 = vector.multi_reduction <maximumf>, %115, %cst_38 [1] : vector<8x8xf32> to vector<8xf32>
    %117 = vector.shape_cast %116 : vector<8xf32> to vector<8x1xf32>
    %118 = vector.broadcast %117 : vector<8x1xf32> to vector<8x8xf32>
    %119 = arith.subf %115, %118 : vector<8x8xf32>
    %120 = math.exp %119 : vector<8x8xf32>
    %cst_39 = arith.constant dense<0.000000e+00> : vector<8xf32>
    %121 = vector.multi_reduction <add>, %120, %cst_39 [1] : vector<8x8xf32> to vector<8xf32>
    %122 = vector.shape_cast %121 : vector<8xf32> to vector<8x1xf32>
    %cst_40 = arith.constant 1.000000e+00 : f32
    %123 = vector.broadcast %cst_40 : f32 to vector<8x1xf32>
    %124 = arith.divf %123, %122 : vector<8x1xf32>
    %125 = vector.broadcast %124 : vector<8x1xf32> to vector<8x8xf32>
    %126 = arith.mulf %120, %125 : vector<8x8xf32>
    %c0_41 = arith.constant 0 : index
    %c0_42 = arith.constant 0 : index
    %127 = vector.load %arg17[%c0_41, %c0_42] : memref<64x8xf32, #tpu.memory_space<vmem>>, vector<8x8xf32>
    tpu.vector_store %arg17[%c0_41, %c0_42], %126 {strides = array<i32>} : memref<64x8xf32, #tpu.memory_space<vmem>>, vector<8x8xf32>,
    %128 = vector.extract_strided_slice %67 {offsets = [0, 8], sizes = [8, 8], strides = [1, 1]} : vector<16x32xf32> to vector<8x8xf32>
    %129 = vector.extract_strided_slice %82 {offsets = [0, 8], sizes = [8, 8], strides = [1, 1]} : vector<16x32xf32> to vector<8x8xf32>
    %130 = tpu.transpose %129, [1, 0] : vector<8x8xf32> -> vector<8x8xf32>
    %cst_43 = arith.constant dense<0.000000e+00> : vector<8x8xf32>
    %131 = tpu.matmul %128, %130, %cst_43 {dimension_numbers = #tpu.dot_dimension_numbers<[1], [0], [0], [1], [0, 0, 1, 1], [], []>} : vector<8x8xf32>, vector<8x8xf32>, vector<8x8xf32> -> vector<8x8xf32>
    %132 = vector.broadcast %106 : vector<1x1xf32> to vector<8x8xf32>
    %133 = arith.mulf %131, %132 : vector<8x8xf32>
    %134 = vector.broadcast %107 : vector<1x8xf32> to vector<8x8xf32>
    %135 = arith.addf %133, %134 : vector<8x8xf32>
    %cst_44 = arith.constant dense<0xFF800000> : vector<8xf32>
    %136 = vector.multi_reduction <maximumf>, %135, %cst_44 [1] : vector<8x8xf32> to vector<8xf32>
    %137 = vector.shape_cast %136 : vector<8xf32> to vector<8x1xf32>
    %138 = vector.broadcast %137 : vector<8x1xf32> to vector<8x8xf32>
    %139 = arith.subf %135, %138 : vector<8x8xf32>
    %140 = math.exp %139 : vector<8x8xf32>
    %cst_45 = arith.constant dense<0.000000e+00> : vector<8xf32>
    %141 = vector.multi_reduction <add>, %140, %cst_45 [1] : vector<8x8xf32> to vector<8xf32>
    %142 = vector.shape_cast %141 : vector<8xf32> to vector<8x1xf32>
    %cst_46 = arith.constant 1.000000e+00 : f32
    %143 = vector.broadcast %cst_46 : f32 to vector<8x1xf32>
    %144 = arith.divf %143, %142 : vector<8x1xf32>
    %145 = vector.broadcast %144 : vector<8x1xf32> to vector<8x8xf32>
    %146 = arith.mulf %140, %145 : vector<8x8xf32>
    %c8 = arith.constant 8 : index
    %c0_47 = arith.constant 0 : index
    %147 = vector.load %arg17[%c8, %c0_47] : memref<64x8xf32, #tpu.memory_space<vmem>>, vector<8x8xf32>
    tpu.vector_store %arg17[%c8, %c0_47], %146 {strides = array<i32>} : memref<64x8xf32, #tpu.memory_space<vmem>>, vector<8x8xf32>,
    %148 = vector.extract_strided_slice %67 {offsets = [0, 16], sizes = [8, 8], strides = [1, 1]} : vector<16x32xf32> to vector<8x8xf32>
    %149 = vector.extract_strided_slice %82 {offsets = [0, 16], sizes = [8, 8], strides = [1, 1]} : vector<16x32xf32> to vector<8x8xf32>
    %150 = tpu.transpose %149, [1, 0] : vector<8x8xf32> -> vector<8x8xf32>
    %cst_48 = arith.constant dense<0.000000e+00> : vector<8x8xf32>
    %151 = tpu.matmul %148, %150, %cst_48 {dimension_numbers = #tpu.dot_dimension_numbers<[1], [0], [0], [1], [0, 0, 1, 1], [], []>} : vector<8x8xf32>, vector<8x8xf32>, vector<8x8xf32> -> vector<8x8xf32>
    %152 = vector.broadcast %106 : vector<1x1xf32> to vector<8x8xf32>
    %153 = arith.mulf %151, %152 : vector<8x8xf32>
    %154 = vector.broadcast %107 : vector<1x8xf32> to vector<8x8xf32>
    %155 = arith.addf %153, %154 : vector<8x8xf32>
    %cst_49 = arith.constant dense<0xFF800000> : vector<8xf32>
    %156 = vector.multi_reduction <maximumf>, %155, %cst_49 [1] : vector<8x8xf32> to vector<8xf32>
    %157 = vector.shape_cast %156 : vector<8xf32> to vector<8x1xf32>
    %158 = vector.broadcast %157 : vector<8x1xf32> to vector<8x8xf32>
    %159 = arith.subf %155, %158 : vector<8x8xf32>
    %160 = math.exp %159 : vector<8x8xf32>
    %cst_50 = arith.constant dense<0.000000e+00> : vector<8xf32>
    %161 = vector.multi_reduction <add>, %160, %cst_50 [1] : vector<8x8xf32> to vector<8xf32>
    %162 = vector.shape_cast %161 : vector<8xf32> to vector<8x1xf32>
    %cst_51 = arith.constant 1.000000e+00 : f32
    %163 = vector.broadcast %cst_51 : f32 to vector<8x1xf32>
    %164 = arith.divf %163, %162 : vector<8x1xf32>
    %165 = vector.broadcast %164 : vector<8x1xf32> to vector<8x8xf32>
    %166 = arith.mulf %160, %165 : vector<8x8xf32>
    %c16 = arith.constant 16 : index
    %c0_52 = arith.constant 0 : index
    %167 = vector.load %arg17[%c16, %c0_52] : memref<64x8xf32, #tpu.memory_space<vmem>>, vector<8x8xf32>
    tpu.vector_store %arg17[%c16, %c0_52], %166 {strides = array<i32>} : memref<64x8xf32, #tpu.memory_space<vmem>>, vector<8x8xf32>,
    %168 = vector.extract_strided_slice %67 {offsets = [0, 24], sizes = [8, 8], strides = [1, 1]} : vector<16x32xf32> to vector<8x8xf32>
    %169 = vector.extract_strided_slice %82 {offsets = [0, 24], sizes = [8, 8], strides = [1, 1]} : vector<16x32xf32> to vector<8x8xf32>
    %170 = tpu.transpose %169, [1, 0] : vector<8x8xf32> -> vector<8x8xf32>
    %cst_53 = arith.constant dense<0.000000e+00> : vector<8x8xf32>
    %171 = tpu.matmul %168, %170, %cst_53 {dimension_numbers = #tpu.dot_dimension_numbers<[1], [0], [0], [1], [0, 0, 1, 1], [], []>} : vector<8x8xf32>, vector<8x8xf32>, vector<8x8xf32> -> vector<8x8xf32>
    %172 = vector.broadcast %106 : vector<1x1xf32> to vector<8x8xf32>
    %173 = arith.mulf %171, %172 : vector<8x8xf32>
    %174 = vector.broadcast %107 : vector<1x8xf32> to vector<8x8xf32>
    %175 = arith.addf %173, %174 : vector<8x8xf32>
    %cst_54 = arith.constant dense<0xFF800000> : vector<8xf32>
    %176 = vector.multi_reduction <maximumf>, %175, %cst_54 [1] : vector<8x8xf32> to vector<8xf32>
    %177 = vector.shape_cast %176 : vector<8xf32> to vector<8x1xf32>
    %178 = vector.broadcast %177 : vector<8x1xf32> to vector<8x8xf32>
    %179 = arith.subf %175, %178 : vector<8x8xf32>
    %180 = math.exp %179 : vector<8x8xf32>
    %cst_55 = arith.constant dense<0.000000e+00> : vector<8xf32>
    %181 = vector.multi_reduction <add>, %180, %cst_55 [1] : vector<8x8xf32> to vector<8xf32>
    %182 = vector.shape_cast %181 : vector<8xf32> to vector<8x1xf32>
    %cst_56 = arith.constant 1.000000e+00 : f32
    %183 = vector.broadcast %cst_56 : f32 to vector<8x1xf32>
    %184 = arith.divf %183, %182 : vector<8x1xf32>
    %185 = vector.broadcast %184 : vector<8x1xf32> to vector<8x8xf32>
    %186 = arith.mulf %180, %185 : vector<8x8xf32>
    %c24 = arith.constant 24 : index
    %c0_57 = arith.constant 0 : index
    %187 = vector.load %arg17[%c24, %c0_57] : memref<64x8xf32, #tpu.memory_space<vmem>>, vector<8x8xf32>
    tpu.vector_store %arg17[%c24, %c0_57], %186 {strides = array<i32>} : memref<64x8xf32, #tpu.memory_space<vmem>>, vector<8x8xf32>,
    %188 = vector.extract_strided_slice %103 {offsets = [1, 0], sizes = [1, 8], strides = [1, 1]} : vector<2x8xf32> to vector<1x8xf32>
    %189 = vector.extract_strided_slice %67 {offsets = [8, 0], sizes = [8, 8], strides = [1, 1]} : vector<16x32xf32> to vector<8x8xf32>
    %190 = vector.extract_strided_slice %82 {offsets = [8, 0], sizes = [8, 8], strides = [1, 1]} : vector<16x32xf32> to vector<8x8xf32>
    %191 = tpu.transpose %190, [1, 0] : vector<8x8xf32> -> vector<8x8xf32>
    %cst_58 = arith.constant dense<0.000000e+00> : vector<8x8xf32>
    %192 = tpu.matmul %189, %191, %cst_58 {dimension_numbers = #tpu.dot_dimension_numbers<[1], [0], [0], [1], [0, 0, 1, 1], [], []>} : vector<8x8xf32>, vector<8x8xf32>, vector<8x8xf32> -> vector<8x8xf32>
    %193 = vector.broadcast %106 : vector<1x1xf32> to vector<8x8xf32>
    %194 = arith.mulf %192, %193 : vector<8x8xf32>
    %195 = vector.broadcast %188 : vector<1x8xf32> to vector<8x8xf32>
    %196 = arith.addf %194, %195 : vector<8x8xf32>
    %cst_59 = arith.constant dense<0xFF800000> : vector<8xf32>
    %197 = vector.multi_reduction <maximumf>, %196, %cst_59 [1] : vector<8x8xf32> to vector<8xf32>
    %198 = vector.shape_cast %197 : vector<8xf32> to vector<8x1xf32>
    %199 = vector.broadcast %198 : vector<8x1xf32> to vector<8x8xf32>
    %200 = arith.subf %196, %199 : vector<8x8xf32>
    %201 = math.exp %200 : vector<8x8xf32>
    %cst_60 = arith.constant dense<0.000000e+00> : vector<8xf32>
    %202 = vector.multi_reduction <add>, %201, %cst_60 [1] : vector<8x8xf32> to vector<8xf32>
    %203 = vector.shape_cast %202 : vector<8xf32> to vector<8x1xf32>
    %cst_61 = arith.constant 1.000000e+00 : f32
    %204 = vector.broadcast %cst_61 : f32 to vector<8x1xf32>
    %205 = arith.divf %204, %203 : vector<8x1xf32>
    %206 = vector.broadcast %205 : vector<8x1xf32> to vector<8x8xf32>
    %207 = arith.mulf %201, %206 : vector<8x8xf32>
    %c32 = arith.constant 32 : index
    %c0_62 = arith.constant 0 : index
    %208 = vector.load %arg17[%c32, %c0_62] : memref<64x8xf32, #tpu.memory_space<vmem>>, vector<8x8xf32>
    tpu.vector_store %arg17[%c32, %c0_62], %207 {strides = array<i32>} : memref<64x8xf32, #tpu.memory_space<vmem>>, vector<8x8xf32>,
    %209 = vector.extract_strided_slice %67 {offsets = [8, 8], sizes = [8, 8], strides = [1, 1]} : vector<16x32xf32> to vector<8x8xf32>
    %210 = vector.extract_strided_slice %82 {offsets = [8, 8], sizes = [8, 8], strides = [1, 1]} : vector<16x32xf32> to vector<8x8xf32>
    %211 = tpu.transpose %210, [1, 0] : vector<8x8xf32> -> vector<8x8xf32>
    %cst_63 = arith.constant dense<0.000000e+00> : vector<8x8xf32>
    %212 = tpu.matmul %209, %211, %cst_63 {dimension_numbers = #tpu.dot_dimension_numbers<[1], [0], [0], [1], [0, 0, 1, 1], [], []>} : vector<8x8xf32>, vector<8x8xf32>, vector<8x8xf32> -> vector<8x8xf32>
    %213 = vector.broadcast %106 : vector<1x1xf32> to vector<8x8xf32>
    %214 = arith.mulf %212, %213 : vector<8x8xf32>
    %215 = vector.broadcast %188 : vector<1x8xf32> to vector<8x8xf32>
    %216 = arith.addf %214, %215 : vector<8x8xf32>
    %cst_64 = arith.constant dense<0xFF800000> : vector<8xf32>
    %217 = vector.multi_reduction <maximumf>, %216, %cst_64 [1] : vector<8x8xf32> to vector<8xf32>
    %218 = vector.shape_cast %217 : vector<8xf32> to vector<8x1xf32>
    %219 = vector.broadcast %218 : vector<8x1xf32> to vector<8x8xf32>
    %220 = arith.subf %216, %219 : vector<8x8xf32>
    %221 = math.exp %220 : vector<8x8xf32>
    %cst_65 = arith.constant dense<0.000000e+00> : vector<8xf32>
    %222 = vector.multi_reduction <add>, %221, %cst_65 [1] : vector<8x8xf32> to vector<8xf32>
    %223 = vector.shape_cast %222 : vector<8xf32> to vector<8x1xf32>
    %cst_66 = arith.constant 1.000000e+00 : f32
    %224 = vector.broadcast %cst_66 : f32 to vector<8x1xf32>
    %225 = arith.divf %224, %223 : vector<8x1xf32>
    %226 = vector.broadcast %225 : vector<8x1xf32> to vector<8x8xf32>
    %227 = arith.mulf %221, %226 : vector<8x8xf32>
    %c40 = arith.constant 40 : index
    %c0_67 = arith.constant 0 : index
    %228 = vector.load %arg17[%c40, %c0_67] : memref<64x8xf32, #tpu.memory_space<vmem>>, vector<8x8xf32>
    tpu.vector_store %arg17[%c40, %c0_67], %227 {strides = array<i32>} : memref<64x8xf32, #tpu.memory_space<vmem>>, vector<8x8xf32>,
    %229 = vector.extract_strided_slice %67 {offsets = [8, 16], sizes = [8, 8], strides = [1, 1]} : vector<16x32xf32> to vector<8x8xf32>
    %230 = vector.extract_strided_slice %82 {offsets = [8, 16], sizes = [8, 8], strides = [1, 1]} : vector<16x32xf32> to vector<8x8xf32>
    %231 = tpu.transpose %230, [1, 0] : vector<8x8xf32> -> vector<8x8xf32>
    %cst_68 = arith.constant dense<0.000000e+00> : vector<8x8xf32>
    %232 = tpu.matmul %229, %231, %cst_68 {dimension_numbers = #tpu.dot_dimension_numbers<[1], [0], [0], [1], [0, 0, 1, 1], [], []>} : vector<8x8xf32>, vector<8x8xf32>, vector<8x8xf32> -> vector<8x8xf32>
    %233 = vector.broadcast %106 : vector<1x1xf32> to vector<8x8xf32>
    %234 = arith.mulf %232, %233 : vector<8x8xf32>
    %235 = vector.broadcast %188 : vector<1x8xf32> to vector<8x8xf32>
    %236 = arith.addf %234, %235 : vector<8x8xf32>
    %cst_69 = arith.constant dense<0xFF800000> : vector<8xf32>
    %237 = vector.multi_reduction <maximumf>, %236, %cst_69 [1] : vector<8x8xf32> to vector<8xf32>
    %238 = vector.shape_cast %237 : vector<8xf32> to vector<8x1xf32>
    %239 = vector.broadcast %238 : vector<8x1xf32> to vector<8x8xf32>
    %240 = arith.subf %236, %239 : vector<8x8xf32>
    %241 = math.exp %240 : vector<8x8xf32>
    %cst_70 = arith.constant dense<0.000000e+00> : vector<8xf32>
    %242 = vector.multi_reduction <add>, %241, %cst_70 [1] : vector<8x8xf32> to vector<8xf32>
    %243 = vector.shape_cast %242 : vector<8xf32> to vector<8x1xf32>
    %cst_71 = arith.constant 1.000000e+00 : f32
    %244 = vector.broadcast %cst_71 : f32 to vector<8x1xf32>
    %245 = arith.divf %244, %243 : vector<8x1xf32>
    %246 = vector.broadcast %245 : vector<8x1xf32> to vector<8x8xf32>
    %247 = arith.mulf %241, %246 : vector<8x8xf32>
    %c48 = arith.constant 48 : index
    %c0_72 = arith.constant 0 : index
    %248 = vector.load %arg17[%c48, %c0_72] : memref<64x8xf32, #tpu.memory_space<vmem>>, vector<8x8xf32>
    tpu.vector_store %arg17[%c48, %c0_72], %247 {strides = array<i32>} : memref<64x8xf32, #tpu.memory_space<vmem>>, vector<8x8xf32>,
    %249 = vector.extract_strided_slice %67 {offsets = [8, 24], sizes = [8, 8], strides = [1, 1]} : vector<16x32xf32> to vector<8x8xf32>
    %250 = vector.extract_strided_slice %82 {offsets = [8, 24], sizes = [8, 8], strides = [1, 1]} : vector<16x32xf32> to vector<8x8xf32>
    %251 = tpu.transpose %250, [1, 0] : vector<8x8xf32> -> vector<8x8xf32>
    %cst_73 = arith.constant dense<0.000000e+00> : vector<8x8xf32>
    %252 = tpu.matmul %249, %251, %cst_73 {dimension_numbers = #tpu.dot_dimension_numbers<[1], [0], [0], [1], [0, 0, 1, 1], [], []>} : vector<8x8xf32>, vector<8x8xf32>, vector<8x8xf32> -> vector<8x8xf32>
    %253 = vector.broadcast %106 : vector<1x1xf32> to vector<8x8xf32>
    %254 = arith.mulf %252, %253 : vector<8x8xf32>
    %255 = vector.broadcast %188 : vector<1x8xf32> to vector<8x8xf32>
    %256 = arith.addf %254, %255 : vector<8x8xf32>
    %cst_74 = arith.constant dense<0xFF800000> : vector<8xf32>
    %257 = vector.multi_reduction <maximumf>, %256, %cst_74 [1] : vector<8x8xf32> to vector<8xf32>
    %258 = vector.shape_cast %257 : vector<8xf32> to vector<8x1xf32>
    %259 = vector.broadcast %258 : vector<8x1xf32> to vector<8x8xf32>
    %260 = arith.subf %256, %259 : vector<8x8xf32>
    %261 = math.exp %260 : vector<8x8xf32>
    %cst_75 = arith.constant dense<0.000000e+00> : vector<8xf32>
    %262 = vector.multi_reduction <add>, %261, %cst_75 [1] : vector<8x8xf32> to vector<8xf32>
    %263 = vector.shape_cast %262 : vector<8xf32> to vector<8x1xf32>
    %cst_76 = arith.constant 1.000000e+00 : f32
    %264 = vector.broadcast %cst_76 : f32 to vector<8x1xf32>
    %265 = arith.divf %264, %263 : vector<8x1xf32>
    %266 = vector.broadcast %265 : vector<8x1xf32> to vector<8x8xf32>
    %267 = arith.mulf %261, %266 : vector<8x8xf32>
    %c56 = arith.constant 56 : index
    %c0_77 = arith.constant 0 : index
    %268 = vector.load %arg17[%c56, %c0_77] : memref<64x8xf32, #tpu.memory_space<vmem>>, vector<8x8xf32>
    tpu.vector_store %arg17[%c56, %c0_77], %267 {strides = array<i32>} : memref<64x8xf32, #tpu.memory_space<vmem>>, vector<8x8xf32>,
    %c0_78 = arith.constant 0 : index
    %c0_79 = arith.constant 0 : index
    %269 = vector.load %arg17[%c0_78, %c0_79] : memref<64x8xf32, #tpu.memory_space<vmem>>, vector<64x8xf32>
    %270 = math.absf %269 : vector<64x8xf32>
    %271 = vector.shape_cast %270 : vector<64x8xf32> to vector<1x64x8xf32>
    %cst_80 = arith.constant dense<0xFF800000> : vector<1xf32>
    %272 = vector.multi_reduction <maximumf>, %271, %cst_80 [1, 2] : vector<1x64x8xf32> to vector<1xf32>
    %273 = vector.shape_cast %272 : vector<1xf32> to vector<1x1x1xf32>
    %274 = vector.extract %273[0, 0, 0] : f32 from vector<1x1x1xf32>
    %275 = vector.broadcast %274 : f32 to vector<1x1xf32>
    %cst_81 = arith.constant 9.99999968E-21 : f32
    %276 = vector.broadcast %cst_81 : f32 to vector<1x1xf32>
    %277 = arith.maximumf %275, %276 : vector<1x1xf32>
    %cst_82 = arith.constant 1.280000e+02 : f32
    %278 = vector.broadcast %cst_82 : f32 to vector<1x1xf32>
    %279 = arith.divf %278, %277 : vector<1x1xf32>
    %280 = vector.broadcast %279 : vector<1x1xf32> to vector<64x8xf32>
    %281 = arith.mulf %269, %280 : vector<64x8xf32>
    %282 = math.roundeven %281 : vector<64x8xf32>
    %cst_83 = arith.constant 7.812500e-03 : f32
    %283 = vector.broadcast %cst_83 : f32 to vector<1x1xf32>
    %284 = arith.mulf %277, %283 : vector<1x1xf32>
    %285 = vector.extract_strided_slice %282 {offsets = [0, 0], sizes = [8, 8], strides = [1, 1]} : vector<64x8xf32> to vector<8x8xf32>
    %286 = vector.extract_strided_slice %97 {offsets = [0, 0], sizes = [8, 8], strides = [1, 1]} : vector<16x32xf32> to vector<8x8xf32>
    %cst_84 = arith.constant dense<0.000000e+00> : vector<8x8xf32>
    %287 = tpu.matmul %285, %286, %cst_84 {dimension_numbers = #tpu.dot_dimension_numbers<[1], [0], [0], [1], [0, 0, 1, 1], [], []>} : vector<8x8xf32>, vector<8x8xf32>, vector<8x8xf32> -> vector<8x8xf32>
    %c0_85 = arith.constant 0 : index
    %c0_86 = arith.constant 0 : index
    %288 = vector.load %arg18[%c0_85, %c0_86] : memref<16x32xf32, #tpu.memory_space<vmem>>, vector<8x8xf32>
    tpu.vector_store %arg18[%c0_85, %c0_86], %287 {strides = array<i32>} : memref<16x32xf32, #tpu.memory_space<vmem>>, vector<8x8xf32>,
    %289 = vector.extract_strided_slice %282 {offsets = [8, 0], sizes = [8, 8], strides = [1, 1]} : vector<64x8xf32> to vector<8x8xf32>
    %290 = vector.extract_strided_slice %97 {offsets = [0, 8], sizes = [8, 8], strides = [1, 1]} : vector<16x32xf32> to vector<8x8xf32>
    %cst_87 = arith.constant dense<0.000000e+00> : vector<8x8xf32>
    %291 = tpu.matmul %289, %290, %cst_87 {dimension_numbers = #tpu.dot_dimension_numbers<[1], [0], [0], [1], [0, 0, 1, 1], [], []>} : vector<8x8xf32>, vector<8x8xf32>, vector<8x8xf32> -> vector<8x8xf32>
    %c0_88 = arith.constant 0 : index
    %c8_89 = arith.constant 8 : index
    %292 = vector.load %arg18[%c0_88, %c8_89] : memref<16x32xf32, #tpu.memory_space<vmem>>, vector<8x8xf32>
    tpu.vector_store %arg18[%c0_88, %c8_89], %291 {strides = array<i32>} : memref<16x32xf32, #tpu.memory_space<vmem>>, vector<8x8xf32>,
    %293 = vector.extract_strided_slice %282 {offsets = [16, 0], sizes = [8, 8], strides = [1, 1]} : vector<64x8xf32> to vector<8x8xf32>
    %294 = vector.extract_strided_slice %97 {offsets = [0, 16], sizes = [8, 8], strides = [1, 1]} : vector<16x32xf32> to vector<8x8xf32>
    %cst_90 = arith.constant dense<0.000000e+00> : vector<8x8xf32>
    %295 = tpu.matmul %293, %294, %cst_90 {dimension_numbers = #tpu.dot_dimension_numbers<[1], [0], [0], [1], [0, 0, 1, 1], [], []>} : vector<8x8xf32>, vector<8x8xf32>, vector<8x8xf32> -> vector<8x8xf32>
    %c0_91 = arith.constant 0 : index
    %c16_92 = arith.constant 16 : index
    %296 = vector.load %arg18[%c0_91, %c16_92] : memref<16x32xf32, #tpu.memory_space<vmem>>, vector<8x8xf32>
    tpu.vector_store %arg18[%c0_91, %c16_92], %295 {strides = array<i32>} : memref<16x32xf32, #tpu.memory_space<vmem>>, vector<8x8xf32>,
    %297 = vector.extract_strided_slice %282 {offsets = [24, 0], sizes = [8, 8], strides = [1, 1]} : vector<64x8xf32> to vector<8x8xf32>
    %298 = vector.extract_strided_slice %97 {offsets = [0, 24], sizes = [8, 8], strides = [1, 1]} : vector<16x32xf32> to vector<8x8xf32>
    %cst_93 = arith.constant dense<0.000000e+00> : vector<8x8xf32>
    %299 = tpu.matmul %297, %298, %cst_93 {dimension_numbers = #tpu.dot_dimension_numbers<[1], [0], [0], [1], [0, 0, 1, 1], [], []>} : vector<8x8xf32>, vector<8x8xf32>, vector<8x8xf32> -> vector<8x8xf32>
    %c0_94 = arith.constant 0 : index
    %c24_95 = arith.constant 24 : index
    %300 = vector.load %arg18[%c0_94, %c24_95] : memref<16x32xf32, #tpu.memory_space<vmem>>, vector<8x8xf32>
    tpu.vector_store %arg18[%c0_94, %c24_95], %299 {strides = array<i32>} : memref<16x32xf32, #tpu.memory_space<vmem>>, vector<8x8xf32>,
    %301 = vector.extract_strided_slice %282 {offsets = [32, 0], sizes = [8, 8], strides = [1, 1]} : vector<64x8xf32> to vector<8x8xf32>
    %302 = vector.extract_strided_slice %97 {offsets = [8, 0], sizes = [8, 8], strides = [1, 1]} : vector<16x32xf32> to vector<8x8xf32>
    %cst_96 = arith.constant dense<0.000000e+00> : vector<8x8xf32>
    %303 = tpu.matmul %301, %302, %cst_96 {dimension_numbers = #tpu.dot_dimension_numbers<[1], [0], [0], [1], [0, 0, 1, 1], [], []>} : vector<8x8xf32>, vector<8x8xf32>, vector<8x8xf32> -> vector<8x8xf32>
    %c8_97 = arith.constant 8 : index
    %c0_98 = arith.constant 0 : index
    %304 = vector.load %arg18[%c8_97, %c0_98] : memref<16x32xf32, #tpu.memory_space<vmem>>, vector<8x8xf32>
    tpu.vector_store %arg18[%c8_97, %c0_98], %303 {strides = array<i32>} : memref<16x32xf32, #tpu.memory_space<vmem>>, vector<8x8xf32>,
    %305 = vector.extract_strided_slice %282 {offsets = [40, 0], sizes = [8, 8], strides = [1, 1]} : vector<64x8xf32> to vector<8x8xf32>
    %306 = vector.extract_strided_slice %97 {offsets = [8, 8], sizes = [8, 8], strides = [1, 1]} : vector<16x32xf32> to vector<8x8xf32>
    %cst_99 = arith.constant dense<0.000000e+00> : vector<8x8xf32>
    %307 = tpu.matmul %305, %306, %cst_99 {dimension_numbers = #tpu.dot_dimension_numbers<[1], [0], [0], [1], [0, 0, 1, 1], [], []>} : vector<8x8xf32>, vector<8x8xf32>, vector<8x8xf32> -> vector<8x8xf32>
    %c8_100 = arith.constant 8 : index
    %c8_101 = arith.constant 8 : index
    %308 = vector.load %arg18[%c8_100, %c8_101] : memref<16x32xf32, #tpu.memory_space<vmem>>, vector<8x8xf32>
    tpu.vector_store %arg18[%c8_100, %c8_101], %307 {strides = array<i32>} : memref<16x32xf32, #tpu.memory_space<vmem>>, vector<8x8xf32>,
    %309 = vector.extract_strided_slice %282 {offsets = [48, 0], sizes = [8, 8], strides = [1, 1]} : vector<64x8xf32> to vector<8x8xf32>
    %310 = vector.extract_strided_slice %97 {offsets = [8, 16], sizes = [8, 8], strides = [1, 1]} : vector<16x32xf32> to vector<8x8xf32>
    %cst_102 = arith.constant dense<0.000000e+00> : vector<8x8xf32>
    %311 = tpu.matmul %309, %310, %cst_102 {dimension_numbers = #tpu.dot_dimension_numbers<[1], [0], [0], [1], [0, 0, 1, 1], [], []>} : vector<8x8xf32>, vector<8x8xf32>, vector<8x8xf32> -> vector<8x8xf32>
    %c8_103 = arith.constant 8 : index
    %c16_104 = arith.constant 16 : index
    %312 = vector.load %arg18[%c8_103, %c16_104] : memref<16x32xf32, #tpu.memory_space<vmem>>, vector<8x8xf32>
    tpu.vector_store %arg18[%c8_103, %c16_104], %311 {strides = array<i32>} : memref<16x32xf32, #tpu.memory_space<vmem>>, vector<8x8xf32>,
    %313 = vector.extract_strided_slice %282 {offsets = [56, 0], sizes = [8, 8], strides = [1, 1]} : vector<64x8xf32> to vector<8x8xf32>
    %314 = vector.extract_strided_slice %97 {offsets = [8, 24], sizes = [8, 8], strides = [1, 1]} : vector<16x32xf32> to vector<8x8xf32>
    %cst_105 = arith.constant dense<0.000000e+00> : vector<8x8xf32>
    %315 = tpu.matmul %313, %314, %cst_105 {dimension_numbers = #tpu.dot_dimension_numbers<[1], [0], [0], [1], [0, 0, 1, 1], [], []>} : vector<8x8xf32>, vector<8x8xf32>, vector<8x8xf32> -> vector<8x8xf32>
    %c8_106 = arith.constant 8 : index
    %c24_107 = arith.constant 24 : index
    %316 = vector.load %arg18[%c8_106, %c24_107] : memref<16x32xf32, #tpu.memory_space<vmem>>, vector<8x8xf32>
    tpu.vector_store %arg18[%c8_106, %c24_107], %315 {strides = array<i32>} : memref<16x32xf32, #tpu.memory_space<vmem>>, vector<8x8xf32>,
    %c0_108 = arith.constant 0 : index
    %c0_109 = arith.constant 0 : index
    %317 = vector.load %arg18[%c0_108, %c0_109] : memref<16x32xf32, #tpu.memory_space<vmem>>, vector<16x32xf32>
    %318 = arith.mulf %284, %99 : vector<1x1xf32>
    %319 = vector.broadcast %318 : vector<1x1xf32> to vector<16x32xf32>
    %320 = arith.mulf %317, %319 : vector<16x32xf32>
    %321 = math.absf %320 : vector<16x32xf32>
    %322 = vector.shape_cast %321 : vector<16x32xf32> to vector<1x16x32xf32>
    %cst_110 = arith.constant dense<0xFF800000> : vector<1xf32>
    %323 = vector.multi_reduction <maximumf>, %322, %cst_110 [1, 2] : vector<1x16x32xf32> to vector<1xf32>
    %324 = vector.shape_cast %323 : vector<1xf32> to vector<1x1x1xf32>
    %325 = vector.extract %324[0, 0, 0] : f32 from vector<1x1x1xf32>
    %326 = vector.broadcast %325 : f32 to vector<1x1xf32>
    %cst_111 = arith.constant 9.99999968E-21 : f32
    %327 = vector.broadcast %cst_111 : f32 to vector<1x1xf32>
    %328 = arith.maximumf %326, %327 : vector<1x1xf32>
    %cst_112 = arith.constant 1.280000e+02 : f32
    %329 = vector.broadcast %cst_112 : f32 to vector<1x1xf32>
    %330 = arith.divf %329, %328 : vector<1x1xf32>
    %331 = vector.broadcast %330 : vector<1x1xf32> to vector<16x32xf32>
    %332 = arith.mulf %320, %331 : vector<16x32xf32>
    %333 = math.roundeven %332 : vector<16x32xf32>
    %cst_113 = arith.constant 7.812500e-03 : f32
    %334 = vector.broadcast %cst_113 : f32 to vector<1x1xf32>
    %335 = arith.mulf %328, %334 : vector<1x1xf32>
    %336 = arith.truncf %333 : vector<16x32xf32> to vector<16x32xbf16>
    %c0_114 = arith.constant 0 : index
    %c0_115 = arith.constant 0 : index
    %337 = vector.load %arg7[%c0_114, %c0_115] : memref<32x32xbf16, #tpu.memory_space<vmem>>, vector<32x32xbf16>
    %cst_116 = arith.constant dense<0.000000e+00> : vector<16x32xf32>
    %338 = tpu.matmul %336, %337, %cst_116 {dimension_numbers = #tpu.dot_dimension_numbers<[1], [0], [0], [1], [0, 0, 1, 1], [], []>} : vector<16x32xbf16>, vector<32x32xbf16>, vector<16x32xf32> -> vector<16x32xf32>
    %c0_117 = arith.constant 0 : index
    %339 = memref.load %arg15[%c0_117] : memref<3xf32, #tpu.memory_space<smem>>
    %340 = vector.broadcast %339 : f32 to vector<1x1xf32>
    %341 = arith.mulf %335, %340 : vector<1x1xf32>
    %342 = vector.broadcast %341 : vector<1x1xf32> to vector<16x32xf32>
    %343 = arith.mulf %338, %342 : vector<16x32xf32>
    %c0_118 = arith.constant 0 : index
    %c0_119 = arith.constant 0 : index
    %344 = vector.load %arg8[%c0_118, %c0_119] : memref<1x32xf32, #tpu.memory_space<vmem>>, vector<1x32xf32>
    %345 = vector.broadcast %344 : vector<1x32xf32> to vector<16x32xf32>
    %346 = arith.addf %343, %345 : vector<16x32xf32>
    %347 = arith.addf %346, %0 : vector<16x32xf32>
    %c0_120 = arith.constant 0 : index
    %c0_121 = arith.constant 0 : index
    %348 = vector.load %arg9[%c0_120, %c0_121] : memref<1x32xf32, #tpu.memory_space<vmem>>, vector<1x32xf32>
    %c0_122 = arith.constant 0 : index
    %c0_123 = arith.constant 0 : index
    %349 = vector.load %arg10[%c0_122, %c0_123] : memref<1x32xf32, #tpu.memory_space<vmem>>, vector<1x32xf32>
    %cst_124 = arith.constant dense<0.000000e+00> : vector<16xf32>
    %350 = vector.multi_reduction <add>, %347, %cst_124 [1] : vector<16x32xf32> to vector<16xf32>
    %351 = vector.shape_cast %350 : vector<16xf32> to vector<16x1xf32>
    %cst_125 = arith.constant 3.200000e+01 : f32
    %352 = vector.broadcast %cst_125 : f32 to vector<16x1xf32>
    %353 = arith.divf %351, %352 : vector<16x1xf32>
    %354 = vector.broadcast %353 : vector<16x1xf32> to vector<16x32xf32>
    %355 = arith.subf %347, %354 : vector<16x32xf32>
    %356 = arith.mulf %355, %355 : vector<16x32xf32>
    %cst_126 = arith.constant dense<0.000000e+00> : vector<16xf32>
    %357 = vector.multi_reduction <add>, %356, %cst_126 [1] : vector<16x32xf32> to vector<16xf32>
    %358 = vector.shape_cast %357 : vector<16xf32> to vector<16x1xf32>
    %cst_127 = arith.constant 3.200000e+01 : f32
    %359 = vector.broadcast %cst_127 : f32 to vector<16x1xf32>
    %360 = arith.divf %358, %359 : vector<16x1xf32>
    %361 = vector.broadcast %353 : vector<16x1xf32> to vector<16x32xf32>
    %362 = arith.subf %347, %361 : vector<16x32xf32>
    %cst_128 = arith.constant 9.99999996E-13 : f32
    %363 = vector.broadcast %cst_128 : f32 to vector<16x1xf32>
    %364 = arith.addf %360, %363 : vector<16x1xf32>
    %365 = math.rsqrt %364 : vector<16x1xf32>
    %366 = vector.broadcast %365 : vector<16x1xf32> to vector<16x32xf32>
    %367 = arith.mulf %362, %366 : vector<16x32xf32>
    %368 = vector.broadcast %348 : vector<1x32xf32> to vector<16x32xf32>
    %369 = arith.mulf %367, %368 : vector<16x32xf32>
    %370 = vector.broadcast %349 : vector<1x32xf32> to vector<16x32xf32>
    %371 = arith.addf %369, %370 : vector<16x32xf32>
    %372 = math.absf %371 : vector<16x32xf32>
    %373 = vector.shape_cast %372 : vector<16x32xf32> to vector<1x16x32xf32>
    %cst_129 = arith.constant dense<0xFF800000> : vector<1xf32>
    %374 = vector.multi_reduction <maximumf>, %373, %cst_129 [1, 2] : vector<1x16x32xf32> to vector<1xf32>
    %375 = vector.shape_cast %374 : vector<1xf32> to vector<1x1x1xf32>
    %376 = vector.extract %375[0, 0, 0] : f32 from vector<1x1x1xf32>
    %377 = vector.broadcast %376 : f32 to vector<1x1xf32>
    %cst_130 = arith.constant 9.99999968E-21 : f32
    %378 = vector.broadcast %cst_130 : f32 to vector<1x1xf32>
    %379 = arith.maximumf %377, %378 : vector<1x1xf32>
    %cst_131 = arith.constant 1.280000e+02 : f32
    %380 = vector.broadcast %cst_131 : f32 to vector<1x1xf32>
    %381 = arith.divf %380, %379 : vector<1x1xf32>
    %382 = vector.broadcast %381 : vector<1x1xf32> to vector<16x32xf32>
    %383 = arith.mulf %371, %382 : vector<16x32xf32>
    %384 = math.roundeven %383 : vector<16x32xf32>
    %cst_132 = arith.constant 7.812500e-03 : f32
    %385 = vector.broadcast %cst_132 : f32 to vector<1x1xf32>
    %386 = arith.mulf %379, %385 : vector<1x1xf32>
    %387 = arith.truncf %384 : vector<16x32xf32> to vector<16x32xbf16>
    %c0_133 = arith.constant 0 : index
    %c0_134 = arith.constant 0 : index
    %388 = vector.load %arg11[%c0_133, %c0_134] : memref<32x64xbf16, #tpu.memory_space<vmem>>, vector<32x64xbf16>
    %cst_135 = arith.constant dense<0.000000e+00> : vector<16x64xf32>
    %389 = tpu.matmul %387, %388, %cst_135 {dimension_numbers = #tpu.dot_dimension_numbers<[1], [0], [0], [1], [0, 0, 1, 1], [], []>} : vector<16x32xbf16>, vector<32x64xbf16>, vector<16x64xf32> -> vector<16x64xf32>
    %c1 = arith.constant 1 : index
    %390 = memref.load %arg15[%c1] : memref<3xf32, #tpu.memory_space<smem>>
    %391 = vector.broadcast %390 : f32 to vector<1x1xf32>
    %392 = arith.mulf %386, %391 : vector<1x1xf32>
    %393 = vector.broadcast %392 : vector<1x1xf32> to vector<16x64xf32>
    %394 = arith.mulf %389, %393 : vector<16x64xf32>
    %c0_136 = arith.constant 0 : index
    %c0_137 = arith.constant 0 : index
    %395 = vector.load %arg12[%c0_136, %c0_137] : memref<1x64xf32, #tpu.memory_space<vmem>>, vector<1x64xf32>
    %396 = vector.broadcast %395 : vector<1x64xf32> to vector<16x64xf32>
    %397 = arith.addf %394, %396 : vector<16x64xf32>
    %cst_138 = arith.constant 5.000000e-01 : f32
    %398 = vector.broadcast %cst_138 : f32 to vector<16x64xf32>
    %399 = arith.mulf %398, %397 : vector<16x64xf32>
    %cst_139 = arith.constant 0.707106769 : f32
    %400 = vector.broadcast %cst_139 : f32 to vector<16x64xf32>
    %401 = arith.mulf %397, %400 : vector<16x64xf32>
    %402 = math.erf %401 : vector<16x64xf32>
    %cst_140 = arith.constant 1.000000e+00 : f32
    %403 = vector.broadcast %cst_140 : f32 to vector<16x64xf32>
    %404 = arith.addf %403, %402 : vector<16x64xf32>
    %405 = arith.mulf %399, %404 : vector<16x64xf32>
    %406 = math.absf %405 : vector<16x64xf32>
    %407 = vector.shape_cast %406 : vector<16x64xf32> to vector<1x16x64xf32>
    %cst_141 = arith.constant dense<0xFF800000> : vector<1xf32>
    %408 = vector.multi_reduction <maximumf>, %407, %cst_141 [1, 2] : vector<1x16x64xf32> to vector<1xf32>
    %409 = vector.shape_cast %408 : vector<1xf32> to vector<1x1x1xf32>
    %410 = vector.extract %409[0, 0, 0] : f32 from vector<1x1x1xf32>
    %411 = vector.broadcast %410 : f32 to vector<1x1xf32>
    %cst_142 = arith.constant 9.99999968E-21 : f32
    %412 = vector.broadcast %cst_142 : f32 to vector<1x1xf32>
    %413 = arith.maximumf %411, %412 : vector<1x1xf32>
    %cst_143 = arith.constant 1.280000e+02 : f32
    %414 = vector.broadcast %cst_143 : f32 to vector<1x1xf32>
    %415 = arith.divf %414, %413 : vector<1x1xf32>
    %416 = vector.broadcast %415 : vector<1x1xf32> to vector<16x64xf32>
    %417 = arith.mulf %405, %416 : vector<16x64xf32>
    %418 = math.roundeven %417 : vector<16x64xf32>
    %cst_144 = arith.constant 7.812500e-03 : f32
    %419 = vector.broadcast %cst_144 : f32 to vector<1x1xf32>
    %420 = arith.mulf %413, %419 : vector<1x1xf32>
    %421 = arith.truncf %418 : vector<16x64xf32> to vector<16x64xbf16>
    %c0_145 = arith.constant 0 : index
    %c0_146 = arith.constant 0 : index
    %422 = vector.load %arg13[%c0_145, %c0_146] : memref<64x32xbf16, #tpu.memory_space<vmem>>, vector<64x32xbf16>
    %cst_147 = arith.constant dense<0.000000e+00> : vector<16x32xf32>
    %423 = tpu.matmul %421, %422, %cst_147 {dimension_numbers = #tpu.dot_dimension_numbers<[1], [0], [0], [1], [0, 0, 1, 1], [], []>} : vector<16x64xbf16>, vector<64x32xbf16>, vector<16x32xf32> -> vector<16x32xf32>
    %c2 = arith.constant 2 : index
    %424 = memref.load %arg15[%c2] : memref<3xf32, #tpu.memory_space<smem>>
    %425 = vector.broadcast %424 : f32 to vector<1x1xf32>
    %426 = arith.mulf %420, %425 : vector<1x1xf32>
    %427 = vector.broadcast %426 : vector<1x1xf32> to vector<16x32xf32>
    %428 = arith.mulf %423, %427 : vector<16x32xf32>
    %c0_148 = arith.constant 0 : index
    %c0_149 = arith.constant 0 : index
    %429 = vector.load %arg14[%c0_148, %c0_149] : memref<1x32xf32, #tpu.memory_space<vmem>>, vector<1x32xf32>
    %430 = vector.broadcast %429 : vector<1x32xf32> to vector<16x32xf32>
    %431 = arith.addf %428, %430 : vector<16x32xf32>
    %432 = arith.addf %431, %347 : vector<16x32xf32>
    %c0_150 = arith.constant 0 : index
    %c0_151 = arith.constant 0 : index
    %433 = vector.load %arg16[%c0_150, %c0_151] : memref<16x32xf32, #tpu.memory_space<vmem>>, vector<16x32xf32>
    tpu.vector_store %arg16[%c0_150, %c0_151], %432 {strides = array<i32>} : memref<16x32xf32, #tpu.memory_space<vmem>>, vector<16x32xf32>,
    return
  }
}

</mosaic_0001>

<bundles_post_ra>
// kernel: tpu_custom_call.1
= control target key start
LH: loop header
LB: loop body
LE: loop exit
PB: predicated region body
PF: predicated region fallthrough
CT: control target
= control target key end

     0   :  { %s3392_s0 = inlined_call_operand.vmem [shape: f32[16,32], index: 0, kind: input, shape index: {}]   ;;  %s3393_s1 = inlined_call_operand.hbm [shape: f32[2,8], index: 1, kind: input, shape index: {}]   ;;  %s3394_s2 = inlined_call_operand.hbm [shape: f32[1,32], index: 2, kind: input, shape index: {}]   ;;  %s3395_s3 = inlined_call_operand.hbm [shape: f32[1,32], index: 3, kind: input, shape index: {}]   ;;  %s3396_s4 = inlined_call_operand.vmem [shape: bf16[32,96], index: 4, kind: input, shape index: {}]   ;;  %s3397_s5 = inlined_call_operand.hbm [shape: f32[1,96], index: 5, kind: input, shape index: {}]   ;;  %s3398_s6 = inlined_call_operand.hbm [shape: f32[1,96], index: 6, kind: input, shape index: {}]   ;;  %s3399_s7 = inlined_call_operand.vmem [shape: bf16[32,32], index: 7, kind: input, shape index: {}]   ;;  %s3400_s8 = inlined_call_operand.hbm [shape: f32[1,32], index: 8, kind: input, shape index: {}]   ;;  %s3401_s9 = inlined_call_operand.hbm [shape: f32[1,32], index: 9, kind: input, shape index: {}]   ;;  %s3402_s10 = inlined_call_operand.vmem [shape: f32[1,32], index: 10, kind: input, shape index: {}]   ;;  %s3403_s11 = inlined_call_operand.vmem [shape: bf16[32,64], index: 11, kind: input, shape index: {}]   ;;  %s3404_s12 = inlined_call_operand.vmem [shape: f32[1,64], index: 12, kind: input, shape index: {}]   ;;  %s3405_s13 = inlined_call_operand.vmem [shape: bf16[64,32], index: 13, kind: input, shape index: {}]   ;;  %s3406_s14 = inlined_call_operand.vmem [shape: f32[1,32], index: 14, kind: input, shape index: {}]   ;;  %s3407_s15 = inlined_call_operand.vmem [shape: f32[3], index: 15, kind: input, shape index: {}]   ;;  %s3408_s16 = inlined_call_operand.hbm [shape: f32[16,32], index: 16, kind: output, shape index: {}]  }
   0x1   :  { %3410 = sst [smem:[#allocation25_spill]] %s3392_s0 }
   0x2   :  { %21 = vsyncpa [#allocation5], 0 }
   0x3   :  { %22 = vsyncpa [#allocation9], 0 }
   0x4   :  { %23 = vsyncpa [#allocation12], 0 }
   0x5   :  { %24 = vsyncpa [#allocation15], 0 }
   0x6   :  { %25 = vsyncpa [#allocation7], 0 }
   0x7   :  { %26 = vsyncpa [#allocation6], 0  ;;  %s2912_s21 = smov [#allocation8]   ;;  %s2913_s23 = smov [#allocation11]  }
   0x8   :  { %s45_s22 = sshll.u32 %s2912_s21, 4  ;;  %s67_s24 = sshll.u32 %s2913_s23, 4  ;;  %s46_s22 = int_to_ptr.vmem [resolvable:$true] %s45_s22  ;;  %s68_s24 = int_to_ptr.vmem [resolvable:$true] %s67_s24 }
   0x9   :  { %s2736_s25 = scalar_lea.vmem %s46_s22, 16  ;;  %s2740_s26 = scalar_lea.vmem %s46_s22, 32 }
   0xa   :  { %p2737_p0 = scmp.ne.s32.totalorder %s46_s22, %s2736_s25  ;;  %p2741_p1 = scmp.lt.s32.totalorder %s46_s22, %s46_s22 }
   0xb   :  { %p2742_p2 = scmp.lt.s32.totalorder %s2740_s26, %s2736_s25 }
   0xd   :  { %p2743_p3 = por %p2742_p2, %p2741_p1 }
   0xf   :  { %p2744_p4 = pnand %p2743_p3, %p2737_p0 }
  0x11   :  { %2747 = shalt.err (!%p2744_p4)
}
  0x12   :  { %48 = dma.hbm_to_vmem [thread:$0]  %s3394_s2, 16, %s46_s22, [#allocation9]  }
  0x13   :  { %s2756_s29 = scalar_lea.vmem %s68_s24, 16  ;;  %s2760_s30 = scalar_lea.vmem %s68_s24, 32 }
  0x14   :  { %p2757_p5 = scmp.ne.s32.totalorder %s68_s24, %s2756_s29  ;;  %p2761_p6 = scmp.lt.s32.totalorder %s68_s24, %s68_s24 }
  0x15   :  { %p2762_p7 = scmp.lt.s32.totalorder %s2760_s30, %s2756_s29 }
  0x17   :  { %p2763_p8 = por %p2762_p7, %p2761_p6 }
  0x19   :  { %p2764_p9 = pnand %p2763_p8, %p2757_p5 }
  0x1b   :  { %2767 = shalt.err (!%p2764_p9)
}
  0x1c   :  { %70 = dma.hbm_to_vmem [thread:$0]  %s3397_s5, 16, %s68_s24, [#allocation12]  }
  0x1d   :  { %s2914_s18 = smov [#allocation14]   ;;  %s2915_s20 = smov [#allocation4]  }
  0x1e   :  { %s89_s19 = sshll.u32 %s2914_s18, 4  ;;  %s35_s21 = sshll.u32 %s2915_s20, 4  ;;  %s90_s19 = int_to_ptr.vmem [resolvable:$true] %s89_s19  ;;  %s36_s21 = int_to_ptr.vmem [resolvable:$true] %s35_s21 }
  0x1f   :  { %s2776_s23 = scalar_lea.vmem %s90_s19, 16  ;;  %s2780_s2 = scalar_lea.vmem %s90_s19, 32 }
  0x20   :  { %p2777_p10 = scmp.ne.s32.totalorder %s90_s19, %s2776_s23  ;;  %p2781_p11 = scmp.lt.s32.totalorder %s90_s19, %s90_s19 }
  0x21   :  { %p2782_p12 = scmp.lt.s32.totalorder %s2780_s2, %s2776_s23 }
  0x23   :  { %p2783_p13 = por %p2782_p12, %p2781_p11 }
  0x25   :  { %p2784_p0 = pnand %p2783_p13, %p2777_p10 }
  0x27   :  { %2787 = shalt.err (!%p2784_p0)
}
  0x28   :  { %92 = dma.hbm_to_vmem [thread:$0]  %s3400_s8, 16, %s90_s19, [#allocation15]  }
  0x29   :  { %s2796_s26 = scalar_lea.vmem %s36_s21, 32  ;;  %p2801_p2 = scmp.lt.s32.totalorder %s36_s21, %s36_s21 }
  0x2a   :  { %p2797_p1 = scmp.ne.s32.totalorder %s36_s21, %s2796_s26  ;;  %p2802_p3 = scmp.lt.s32.totalorder %s2796_s26, %s2796_s26 }
  0x2c   :  { %p2803_p4 = por %p2802_p3, %p2801_p2 }
  0x2e   :  { %p2804_p5 = pnand %p2803_p4, %p2797_p1 }
  0x30   :  { %2807 = shalt.err (!%p2804_p5)
}
  0x31   :  { %38 = dma.hbm_to_vmem [thread:$0]  %s3393_s1, 32, %s36_s21, [#allocation5]  }
  0x32   :  { %s2916_s27 = smov [#allocation10]   ;;  %s2917_s29 = smov [#allocation13]  }
  0x33   :  { %s55_s28 = sshll.u32 %s2916_s27, 4  ;;  %s77_s30 = sshll.u32 %s2917_s29, 4  ;;  %s56_s28 = int_to_ptr.vmem [resolvable:$true] %s55_s28  ;;  %s78_s30 = int_to_ptr.vmem [resolvable:$true] %s77_s30 }
  0x34   :  { %s2816_s0 = scalar_lea.vmem %s56_s28, 16  ;;  %s2820_s8 = scalar_lea.vmem %s56_s28, 32 }
  0x35   :  { %p2817_p6 = scmp.ne.s32.totalorder %s56_s28, %s2816_s0  ;;  %p2821_p7 = scmp.lt.s32.totalorder %s56_s28, %s56_s28 }
  0x36   :  { %p2822_p8 = scmp.lt.s32.totalorder %s2820_s8, %s2816_s0 }
  0x38   :  { %p2823_p9 = por %p2822_p8, %p2821_p7 }
  0x3a   :  { %p2824_p10 = pnand %p2823_p9, %p2817_p6 }
  0x3c   :  { %2827 = shalt.err (!%p2824_p10)
}
  0x3d   :  { %58 = dma.hbm_to_vmem [thread:$0]  %s3395_s3, 16, %s56_s28, [#allocation9]  }
  0x3e   :  { %s2836_s19 = scalar_lea.vmem %s78_s30, 16  ;;  %s2840_s1 = scalar_lea.vmem %s78_s30, 32 }
  0x3f   :  { %p2837_p11 = scmp.ne.s32.totalorder %s78_s30, %s2836_s19  ;;  %p2841_p12 = scmp.lt.s32.totalorder %s78_s30, %s78_s30 }
  0x40   :  { %p2842_p13 = scmp.lt.s32.totalorder %s2840_s1, %s2836_s19 }
  0x42   :  { %p2843_p0 = por %p2842_p13, %p2841_p12 }
  0x44   :  { %p2844_p1 = pnand %p2843_p0, %p2837_p11 }
  0x46   :  { %2847 = shalt.err (!%p2844_p1)
}
  0x47   :  { %80 = dma.hbm_to_vmem [thread:$0]  %s3398_s6, 16, %s78_s30, [#allocation12]  }
  0x48   :  { %s119_s22 = sshll.u32 %s3407_s15, 4  ;;  %s2918_s25 = smov [#allocation16]   ;;  %s120_s22 = int_to_ptr.vmem [resolvable:$true] %s119_s22 }
  0x49   :  { %s99_s26 = sshll.u32 %s2918_s25, 4  ;;  %s100_s26 = int_to_ptr.vmem [resolvable:$true] %s99_s26 }
  0x4a   :  { %s2856_s3 = scalar_lea.vmem %s100_s26, 16  ;;  %s2860_s5 = scalar_lea.vmem %s100_s26, 32 }
  0x4b   :  { %p2857_p2 = scmp.ne.s32.totalorder %s100_s26, %s2856_s3  ;;  %p2861_p3 = scmp.lt.s32.totalorder %s100_s26, %s100_s26 }
  0x4c   :  { %p2862_p4 = scmp.lt.s32.totalorder %s2860_s5, %s2856_s3 }
  0x4e   :  { %p2863_p5 = por %p2862_p4, %p2861_p3 }
  0x50   :  { %p2864_p6 = pnand %p2863_p5, %p2857_p2 }
  0x52   :  { %2867 = shalt.err (!%p2864_p6)
}
  0x53   :  { %102 = dma.hbm_to_vmem [thread:$0]  %s3401_s9, 16, %s100_s26, [#allocation15]  }
  0x54   :  { %s2868_s6 = scalar_lea.vmem %s120_s22, 16  ;;  %p2873_p8 = scmp.lt.s32.totalorder %s120_s22, %s120_s22 }
  0x55   :  { %p2869_p7 = scmp.ne.s32.totalorder %s120_s22, %s2868_s6  ;;  %p2874_p9 = scmp.lt.s32.totalorder %s2868_s6, %s2868_s6 }
  0x57   :  { %p2875_p10 = por %p2874_p9, %p2873_p8 }
  0x59   :  { %p2876_p11 = pnand %p2875_p10, %p2869_p7 }
  0x5b   :  { %2879 = shalt.err (!%p2876_p11)
}
  0x5c   :  { %s2919_s15 = smov [#allocation17]  }
  0x5d   :  { %122 = dma.vmem_to_smem %s120_s22, 16, %s2919_s15, [#allocation7]  }
  0x5e   :  { %2900 = dma.done.wait [#allocation5], 32  }
  0x5f   :  { %2901 = vsyncadd [#allocation5], 4294967264 }
  0x60   :  { %2902 = dma.done.wait [#allocation9], 32  }
  0x61   :  { %2903 = vsyncadd [#allocation9], 4294967264 }
  0x62   :  { %2904 = dma.done.wait [#allocation12], 32  }
  0x63   :  { %2905 = vsyncadd [#allocation12], 4294967264 }
  0x64   :  { %2906 = dma.done.wait [#allocation15], 32  }
  0x65   :  { %2907 = vsyncadd [#allocation15], 4294967264 }
  0x66   :  { %2908 = dma.done.wait [#allocation7], 16  }
  0x67   :  { %2909 = vsyncadd [#allocation7], 4294967280 }
  0x68   :  { %147 = sfence }
  0x69   :  { %s3411_s29 = sld [smem:[#allocation25_spill]]  ;;  %vm154_vm0 = vcmask 261120   ;;  %v2228_v21 = vld [vmem:[#allocation8] ss:$0 sm:$0xff]  ;;  %v2229_v23 = vld [vmem:[#allocation10] ss:$0 sm:$0xff] }
  0x6a   :  { %v2656_v35 = vld [vmem:[%s3396_s4 + $0x8] sm:$0xff]   ;;  %v2920_v36 = vmov 0.0   ;;  %vm2921_vm1 = vmmov 0   ;;  %v2657_v37 = vld [vmem:[%s3396_s4] sm:$0xff]   ;;  %vm324_vm4 = vcmask 523520   ;;  %vm346_vm5 = vcmask 785920  }
  0x6b   :  { %2322 = vmatprep.subr.bf16.mxu0 %v2920_v36  ;;  %2326 = vmatprep.mubr.msk.bf16.mxu0 %vm2921_vm1, %v2920_v36  ;;  %s2922_s21 = smov 88   ;;  %s2923_s23 = smov 96   ;;  %vm375_vm10 = vcmask 64512  }
  0x6c   :  { %2323 = vmatpush3.bf16.msra.mxu0 %v2656_v35  ;;  %2335 = vmatprep.subr.mxu1 %v2920_v36  ;;  %s2924_s2 = smov 112   ;;  %s2925_s22 = smov 120  }
  0x6d   :  { %2324 = vmatprep.subr.bf16.mxu0 %v2920_v36  ;;  %2337 = vmatprep.mubr.msk.f32.mxu1 %vm2921_vm1, %v2920_v36  ;;  %s2926_s25 = smov 80   ;;  %s2927_s26 = smov 72  }
  0x6e   :  { %s2928_s3 = smov 104   ;;  %s2929_s24 = smov 64  }
  0x6f   :  { %v149_v0 = vld [vmem:[%s3411_s29] sm:$0xff]  ;;  %v150_v1 = vld [vmem:[%s3411_s29 + $0x8] sm:$0xff]  ;;  %s2930_s27 = smov 56   ;;  %s2931_s6 = smov 48  }
  0x70   :  { %v155_v2 = vsel %vm154_vm0, %v149_v0, 0.0  ;;  %v158_v3 = vsel %vm154_vm0, %v150_v1, 0.0  ;;  %2325 = vmatpush3.bf16.msra.mxu0 %v2657_v37  ;;  %s2932_s15 = smov 40   ;;  %s2933_s28 = smov 8  }
  0x71   :  { %156 = vadd.xlane.f32.xlu0 %v155_v2  ;;  %2330 = vmatprep.subr.mxu0 %v2920_v36  ;;  %v285_v2 = vlaneseq  ;;  %s2934_s30 = smov 16   ;;  %s2935_s0 = smov 24  }
  0x75   :  { %159 = vadd.xlane.f32.xlu0 %v158_v3 }
  0xfa   :  { %v157_v4 = vpop.xlane.xlu0 %156 }
  0xfb   :  { %v162_v5 = vmul.f32 0.03125, %v157_v4  ;;  %v3076_v4 = vshrl.u32 %v285_v2, 7 }
  0xfd   :  { %v164_v6 = vsub.f32 %v149_v0, %v162_v5  ;;  %v282_v5 = vld [vmem:[#allocation11] sm:$0x1] }
  0xfe   :  { %v160_v7 = vpop.xlane.xlu0 %159 }
  0xff   :  { %v163_v8 = vmul.f32 0.03125, %v160_v7  ;;  %v166_v9 = vmul.f32 %v164_v6, %v164_v6  ;;  %v287_v7 = vsub.s32 0, %v3076_v4 }
 0x101   :  { %v165_v10 = vsub.f32 %v150_v1, %v163_v8  ;;  %v168_v11 = vsel %vm154_vm0, %v166_v9, 0.0 }
 0x102   :  { %169 = vadd.xlane.f32.xlu1 %v168_v11 }
 0x103   :  { %v167_v12 = vmul.f32 %v165_v10, %v165_v10 }
 0x105   :  { %v171_v13 = vsel %vm154_vm0, %v167_v12, 0.0 }
 0x106   :  { %172 = vadd.xlane.f32.xlu1 %v171_v13 }
 0x18b   :  { %v170_v14 = vpop.xlane.xlu1 %169 }
 0x18c   :  { %v174_v15 = vmul.f32 0.03125, %v170_v14 }
 0x18e   :  { %v176_v16 = vadd.f32 1e-12, %v174_v15 }
 0x18f   :  { %v173_v17 = vpop.xlane.xlu1 %172 }
 0x190   :  { %2666 = vrsqrt.f32 %v176_v16  ;;  %v175_v18 = vmul.f32 0.03125, %v173_v17 }
 0x192   :  { %v177_v19 = vadd.f32 1e-12, %v175_v18 }
 0x194   :  { %2668 = vrsqrt.f32 %v177_v19 }
 0x19d   :  { %v2667_v20 = vpop.eup %2666 }
 0x19e   :  { %v180_v22 = vmul.f32 %v2667_v20, %v164_v6 }
 0x1a0   :  { %v188_v24 = vmul.f32 %v2228_v21, %v180_v22 }
 0x1a1   :  { %v2669_v25 = vpop.eup %2668 }
 0x1a2   :  { %v181_v26 = vmul.f32 %v2669_v25, %v165_v10  ;;  %v196_v27 = vadd.f32 %v2229_v23, %v188_v24  ;;  %v2233_v10 = vld [vmem:[#allocation13] ss:$0 sm:$0xff] }
 0x1a4   :  { %v189_v28 = vmul.f32 %v2228_v21, %v181_v26  ;;  %v198_v30 = vand.u32 2147483647, %v196_v27 }
 0x1a6   :  { %v197_v29 = vadd.f32 %v2229_v23, %v189_v28  ;;  %v200_v32 = vsel %vm154_vm0, %v198_v30, -inf }
 0x1a8   :  { %v199_v31 = vand.u32 2147483647, %v197_v29 }
 0x1aa   :  { %v201_v33 = vsel %vm154_vm0, %v199_v31, -inf }
 0x1ab   :  { %v202_v34 = vmax.f32 %v200_v32, %v201_v33 }
 0x1ad   :  { %203 = vmax.xlane.f32.xlu0 %v202_v34 }
 0x236   :  { %v204_v38 = vpop.xlane.xlu0 %203 }
 0x237   :  { %v205_v39 = vrot.slane %v204_v38, 4 }
 0x239   :  { %v206_v40 = vmax.f32 %v204_v38, %v205_v39 }
 0x23b   :  { %v207_v41 = vrot.slane %v206_v40, 2 }
 0x23d   :  { %v208_v42 = vmax.f32 %v206_v40, %v207_v41 }
 0x23f   :  { %v209_v43 = vrot.slane %v208_v42, 1 }
 0x241   :  { %v210_v44 = vmax.f32 %v208_v42, %v209_v43 }
 0x243   :  { %2438 = vpush %v210_v44 }
 0x274   :  { %s2439_s1 = spop %2438 }
 0x275   :  { %v212_v45 = vstv %s2439_s1 }
 0x276   :  { %v213_v46 = vmax.f32 %v212_v45, 1e-20 }
 0x278   :  { %2670 = vrcp.f32 %v213_v46  ;;  %v220_v3 = vmul.f32 0.0078125, %v213_v46 }
 0x27a   :  { %v283_v6 = vmul.f32 %v282_v5, %v220_v3 }
 0x27c   :  { %v288_v8 = vrot.slane %v283_v6, %v287_v7 }
 0x285   :  { %v2671_v47 = vpop.eup %2670 }
 0x286   :  { %v215_v48 = vmul.f32 128.0, %v2671_v47 }
 0x288   :  { %v216_v49 = vmul.f32 %v215_v48, %v196_v27  ;;  %v217_v50 = vmul.f32 %v215_v48, %v197_v29 }
 0x28a   :  { %v2442_v51 = vcvt.f32.s32 %v216_v49  ;;  %v2450_v52 = vcvt.f32.s32 %v217_v50  ;;  %v2440_v54 = vand.u32 2147483647, %v216_v49  ;;  %v2445_v57 = vand.u32 2147483648, %v216_v49 }
 0x28b   :  { %v2448_v58 = vand.u32 2147483647, %v217_v50  ;;  %v2453_v60 = vand.u32 2147483648, %v217_v50 }
 0x28c   :  { %v2443_v53 = vcvt.s32.f32 %v2442_v51  ;;  %v2451_v55 = vcvt.s32.f32 %v2450_v52  ;;  %vm2441_vm2 = vcmp.lt.f32.partialorder %v2440_v54, 8388608.0 }
 0x28d   :  { %vm2449_vm3 = vcmp.lt.f32.partialorder %v2448_v58, 8388608.0 }
 0x28e   :  { %v2444_v56 = vand.u32 2147483647, %v2443_v53  ;;  %v2452_v59 = vand.u32 2147483647, %v2451_v55 }
 0x290   :  { %v2446_v61 = vor.u32 %v2445_v57, %v2444_v56  ;;  %v2454_v62 = vor.u32 %v2453_v60, %v2452_v59 }
 0x292   :  { %v2447_v63 = vsel %vm2441_vm2, %v2446_v61, %v216_v49  ;;  %v2455_v0 = vsel %vm2449_vm3, %v2454_v62, %v217_v50 }
 0x293   :  { %v221_v1 = vpack.c.bf16 %v2455_v0, %v2447_v63 }
 0x295   :  { %2327 = vmatmul.mubr.msk.bf16.vlgmr.msra.gmra.mxu0 %vm154_vm0, %v221_v1 }
 0x296   :  { %2332 = vmatprep.mubr.msk.f32.mxu0 %vm2921_vm1, %v2920_v36 }
 0x355   :  { %v275_v9 = vpop.f32.mrf.mxu0 }
 0x356   :  { %v290_v11 = vmul.f32 %v288_v8, %v275_v9 }
 0x357   :  { %v2328_v12 = vpop.f32.mrf.mxu0 }
 0x358   :  { %v3081_v13 = vadd.f32 %v2233_v10, %v290_v11 }
 0x359   :  { %v278_v14 = vpop.f32.mrf.mxu0 }
 0x35a   :  { %v291_v15 = vmul.f32 %v288_v8, %v278_v14  ;;  %v301_v17 = vand.u32 2147483647, %v3081_v13 }
 0x35b   :  { %v2329_v16 = vpop.f32.mrf.mxu0 }
 0x35c   :  { %v3084_v18 = vadd.f32 %v2233_v10, %v291_v15  ;;  %v325_v20 = vsel %vm324_vm4, %v301_v17, -inf  ;;  %v303_v21 = vsel %vm154_vm0, %v301_v17, -inf  ;;  %v3089_v24 = vsel %vm346_vm5, %v301_v17, -inf }
 0x35e   :  { %v302_v19 = vand.u32 2147483647, %v3084_v18 }
 0x360   :  { %v326_v22 = vsel %vm324_vm4, %v302_v19, -inf  ;;  %v304_v23 = vsel %vm154_vm0, %v302_v19, -inf  ;;  %v3091_v25 = vsel %vm346_vm5, %v302_v19, -inf }
 0x361   :  { %v327_v26 = vmax.f32 %v325_v20, %v326_v22  ;;  %v305_v27 = vmax.f32 %v303_v21, %v304_v23  ;;  %v349_v28 = vmax.f32 %v3089_v24, %v3091_v25 }
 0x363   :  { %328 = vmax.xlane.f32.xlu0 %v327_v26  ;;  %306 = vmax.xlane.f32.xlu1 %v305_v27 }
 0x3ec   :  { %v329_v29 = vpop.xlane.xlu0 %328  ;;  %v307_v30 = vpop.xlane.xlu1 %306 }
 0x3ed   :  { %v330_v31 = vrot.slane %v329_v29, 4  ;;  %v308_v32 = vrot.slane %v307_v30, 4 }
 0x3ef   :  { %v331_v33 = vmax.f32 %v329_v29, %v330_v31  ;;  %v309_v34 = vmax.f32 %v307_v30, %v308_v32 }
 0x3f1   :  { %v332_v35 = vrot.slane %v331_v33, 2  ;;  %v310_v37 = vrot.slane %v309_v34, 2 }
 0x3f3   :  { %v311_v38 = vmax.f32 %v309_v34, %v310_v37  ;;  %v333_v39 = vmax.f32 %v331_v33, %v332_v35 }
 0x3f5   :  { %v312_v40 = vrot.slane %v311_v38, 1  ;;  %v334_v41 = vrot.slane %v333_v39, 1 }
 0x3f7   :  { %v313_v42 = vmax.f32 %v311_v38, %v312_v40  ;;  %v335_v43 = vmax.f32 %v333_v39, %v334_v41 }
 0x3f9   :  { %2456 = vpush %v313_v42 }
 0x3fa   :  { %2474 = vpush %v335_v43 }
 0x42a   :  { %s2457_s4 = spop %2456 }
 0x42b   :  { %v315_v44 = vstv %s2457_s4  ;;  %s2475_s20 = spop %2474 }
 0x42c   :  { %v316_v45 = vmax.f32 %v315_v44, 1e-20  ;;  %v337_v46 = vstv %s2475_s20 }
 0x42d   :  { %v338_v47 = vmax.f32 %v337_v46, 1e-20 }
 0x42e   :  { %2672 = vrcp.f32 %v316_v45  ;;  %v323_v48 = vmul.f32 0.0078125, %v316_v45  ;;  %v151_v45 = vld [vmem:[#allocation4] sm:$0x3] }
 0x42f   :  { %2674 = vrcp.f32 %v338_v47  ;;  %v345_v49 = vmul.f32 0.0078125, %v338_v47  ;;  %v368_v46 = vsub.f32 1.0, %v151_v45 }
 0x431   :  { %v3095_v50 = vmul.f32 %v345_v49, %v323_v48  ;;  %v369_v47 = vmul.f32 -1000.0, %v368_v46 }
 0x433   :  { %v455_v48 = vrot.slane %v369_v47, %v287_v7  ;;  %v371_v49 = vmul.f32 0.35355338, %v3095_v50 }
 0x43b   :  { %v2673_v51 = vpop.eup %2672 }
 0x43c   :  { %v2675_v52 = vpop.eup %2674  ;;  %v318_v53 = vmul.f32 128.0, %v2673_v51 }
 0x43d   :  { %v340_v54 = vmul.f32 128.0, %v2675_v52 }
 0x43e   :  { %v319_v55 = vmul.f32 %v318_v53, %v3081_v13  ;;  %v320_v59 = vmul.f32 %v318_v53, %v3084_v18 }
 0x43f   :  { %v341_v56 = vmul.f32 %v340_v54, %v3081_v13  ;;  %v342_v57 = vmul.f32 %v340_v54, %v3084_v18 }
 0x440   :  { %v2460_v58 = vcvt.f32.s32 %v319_v55  ;;  %v2468_v6 = vcvt.f32.s32 %v320_v59  ;;  %v2463_v9 = vand.u32 2147483648, %v319_v55  ;;  %v2458_v10 = vand.u32 2147483647, %v319_v55 }
 0x441   :  { %v2478_v60 = vcvt.f32.s32 %v341_v56  ;;  %v2486_v62 = vcvt.f32.s32 %v342_v57  ;;  %v2476_v0 = vand.u32 2147483647, %v341_v56  ;;  %v2481_v1 = vand.u32 2147483648, %v341_v56 }
 0x442   :  { %v2461_v61 = vcvt.s32.f32 %v2460_v58  ;;  %v2469_v15 = vcvt.s32.f32 %v2468_v6  ;;  %v2489_v16 = vand.u32 2147483648, %v342_v57  ;;  %vm2459_vm7 = vcmp.lt.f32.partialorder %v2458_v10, 8388608.0 }
 0x443   :  { %v2479_v63 = vcvt.s32.f32 %v2478_v60  ;;  %v2487_v5 = vcvt.s32.f32 %v2486_v62  ;;  %vm2477_vm6 = vcmp.lt.f32.partialorder %v2476_v0, 8388608.0  ;;  %v2484_v17 = vand.u32 2147483647, %v342_v57 }
 0x444   :  { %v2462_v3 = vand.u32 2147483647, %v2461_v61  ;;  %v2470_v21 = vand.u32 2147483647, %v2469_v15  ;;  %v2471_v22 = vand.u32 2147483648, %v320_v59  ;;  %v830_v61 = vsub.s32 1, %v3076_v4 }
 0x445   :  { %v2480_v2 = vand.u32 2147483647, %v2479_v63  ;;  %v2488_v14 = vand.u32 2147483647, %v2487_v5  ;;  %vm2485_vm8 = vcmp.lt.f32.partialorder %v2484_v17, 8388608.0 }
 0x446   :  { %v2464_v12 = vor.u32 %v2463_v9, %v2462_v3  ;;  %v2466_v23 = vand.u32 2147483647, %v320_v59  ;;  %v2472_v27 = vor.u32 %v2471_v22, %v2470_v21  ;;  %v831_v0 = vrot.slane %v369_v47, %v830_v61 }
 0x447   :  { %v2482_v8 = vor.u32 %v2481_v1, %v2480_v2  ;;  %v2490_v20 = vor.u32 %v2489_v16, %v2488_v14 }
 0x448   :  { %v2465_v19 = vsel %vm2459_vm7, %v2464_v12, %v319_v55  ;;  %vm2467_vm9 = vcmp.lt.f32.partialorder %v2466_v23, 8388608.0  ;;  %vm1344_vm7 = vcmask 130112  }
 0x449   :  { %v2483_v11 = vsel %vm2477_vm6, %v2482_v8, %v341_v56  ;;  %v2491_v26 = vsel %vm2485_vm8, %v2490_v20, %v342_v57  ;;  %v2473_v29 = vsel %vm2467_vm9, %v2472_v27, %v320_v59  ;;  %vm1426_vm8 = vcmask 195712  }
 0x44a   :  { %472 = vrot.lane.b32.xlu0 %v2483_v11, %s2922_s21  ;;  %373 = vrot.lane.b32.xlu1 %v2483_v11, %s2923_s23  ;;  %vm1508_vm9 = vcmask 261312  }
 0x44e   :  { %563 = vrot.lane.b32.xlu0 %v2465_v19, %s2924_s2  ;;  %470 = vrot.lane.b32.xlu1 %v2465_v19, %s2925_s22 }
 0x452   :  { %750 = vrot.lane.b32.xlu0 %v2491_v26, %s2923_s23  ;;  %565 = vrot.lane.b32.xlu1 %v2483_v11, %s2926_s25 }
 0x456   :  { %846 = vrot.lane.b32.xlu0 %v2473_v29, %s2925_s22  ;;  %658 = vrot.lane.b32.xlu1 %v2483_v11, %s2927_s26 }
 0x45a   :  { %1034 = vrot.lane.b32.xlu0 %v2491_v26, %s2927_s26  ;;  %656 = vrot.lane.b32.xlu1 %v2465_v19, %s2928_s3 }
 0x45e   :  { %1032 = vrot.lane.b32.xlu0 %v2473_v29, %s2928_s3  ;;  %848 = vrot.lane.b32.xlu1 %v2491_v26, %s2922_s21 }
 0x462   :  { %941 = vrot.lane.b32.xlu1 %v2491_v26, %s2926_s25 }
 0x466   :  { %939 = vrot.lane.b32.xlu1 %v2473_v29, %s2924_s2 }
 0x4bc   :  { %v473_v30 = vpop.permute.xlu0 %472  ;;  %v374_v31 = vpop.permute.xlu1 %373 }
 0x4bd   :  { %2331 = vmatpush3.xpose.msk.msra.mxu0 %vm375_vm10, %v374_v31  ;;  %2336 = vmatpush3.xpose.msk.msra.mxu1 %vm375_vm10, %v473_v30 }
 0x4be   :  { %2340 = vmatprep.subr.mxu1 %v2920_v36  ;;  %2345 = vmatprep.subr.mxu0 %v2920_v36 }
 0x4c0   :  { %v564_v32 = vpop.permute.xlu0 %563  ;;  %v471_v33 = vpop.permute.xlu1 %470  ;;  %2333 = vmatmul.mubr.msk.f32.vlgmr.msra.gmra.mxu0 %vm375_vm10, %v2465_v19 }
 0x4c1   :  { %2338 = vmatmul.mubr.msk.f32.vlgmr.msra.gmra.mxu1 %vm375_vm10, %v471_v33  ;;  %2347 = vmatprep.mubr.msk.f32.mxu0 %vm2921_vm1, %v2920_v36 }
 0x4c2   :  { %2342 = vmatprep.mubr.msk.f32.mxu1 %vm2921_vm1, %v2920_v36 }
 0x4c4   :  { %v566_v34 = vpop.permute.xlu1 %565  ;;  %v751_v35 = vpop.permute.xlu0 %750 }
 0x4c5   :  { %2341 = vmatpush3.xpose.msk.msra.mxu1 %vm375_vm10, %v566_v34 }
 0x4c6   :  { %2350 = vmatprep.subr.mxu1 %v2920_v36 }
 0x4c8   :  { %2343 = vmatmul.mubr.msk.f32.vlgmr.msra.gmra.mxu1 %vm375_vm10, %v564_v32  ;;  %v659_v37 = vpop.permute.xlu1 %658  ;;  %v847_v38 = vpop.permute.xlu0 %846 }
 0x4c9   :  { %2346 = vmatpush3.xpose.msk.msra.mxu0 %vm375_vm10, %v659_v37  ;;  %2351 = vmatpush3.xpose.msk.msra.mxu1 %vm375_vm10, %v751_v35 }
 0x4ca   :  { %2352 = vmatprep.mubr.msk.f32.mxu1 %vm2921_vm1, %v2920_v36  ;;  %2355 = vmatprep.subr.mxu0 %v2920_v36 }
 0x4cb   :  { %2360 = vmatprep.subr.mxu1 %v2920_v36 }
 0x4cc   :  { %2353 = vmatmul.mubr.msk.f32.vlgmr.msra.gmra.mxu1 %vm375_vm10, %v2473_v29  ;;  %v657_v39 = vpop.permute.xlu1 %656  ;;  %v1035_v41 = vpop.permute.xlu0 %1034 }
 0x4cd   :  { %2348 = vmatmul.mubr.msk.f32.vlgmr.msra.gmra.mxu0 %vm375_vm10, %v657_v39  ;;  %2362 = vmatprep.mubr.msk.f32.mxu1 %vm2921_vm1, %v2920_v36 }
 0x4ce   :  { %2357 = vmatprep.mubr.msk.f32.mxu0 %vm2921_vm1, %v2920_v36 }
 0x4d0   :  { %v849_v40 = vpop.permute.xlu1 %848  ;;  %v1033_v43 = vpop.permute.xlu0 %1032 }
 0x4d1   :  { %2356 = vmatpush3.xpose.msk.msra.mxu0 %vm375_vm10, %v849_v40 }
 0x4d2   :  { %2365 = vmatprep.subr.mxu0 %v2920_v36 }
 0x4d4   :  { %v942_v42 = vpop.permute.xlu1 %941  ;;  %2358 = vmatmul.mubr.msk.f32.vlgmr.msra.gmra.mxu0 %vm375_vm10, %v847_v38 }
 0x4d5   :  { %2361 = vmatpush3.xpose.msk.msra.mxu1 %vm375_vm10, %v942_v42  ;;  %2366 = vmatpush3.xpose.msk.msra.mxu0 %vm375_vm10, %v1035_v41 }
 0x4d6   :  { %2367 = vmatprep.mubr.msk.f32.mxu0 %vm2921_vm1, %v2920_v36  ;;  %2370 = vmatprep.subr.mxu1 %v2920_v36 }
 0x4d7   :  { %2375 = vmatprep.subr.mxu0 %v2920_v36 }
 0x4d8   :  { %v940_v44 = vpop.permute.xlu1 %939  ;;  %2368 = vmatmul.mubr.msk.f32.vlgmr.msra.gmra.mxu0 %vm375_vm10, %v1033_v43 }
 0x4d9   :  { %2363 = vmatmul.mubr.msk.f32.vlgmr.msra.gmra.mxu1 %vm375_vm10, %v940_v44  ;;  %2377 = vmatprep.mubr.msk.f32.mxu0 %vm2921_vm1, %v2920_v36 }
 0x4da   :  { %2372 = vmatprep.mubr.msk.f32.mxu1 %vm2921_vm1, %v2920_v36 }
 0x580   :  { %v447_v51 = vpop.f32.mrf.mxu0 }
 0x581   :  { %v451_v52 = vmul.f32 %v447_v51, %v371_v49  ;;  %v544_v53 = vpop.f32.mrf.mxu1 }
 0x582   :  { %v548_v54 = vmul.f32 %v544_v53, %v371_v49  ;;  %v2334_v55 = vpop.f32.mrf.mxu0 }
 0x583   :  { %v2339_v56 = vpop.f32.mrf.mxu1  ;;  %v456_v57 = vadd.f32 %v455_v48, %v451_v52 }
 0x584   :  { %v549_v58 = vadd.f32 %v548_v54, %v455_v48 }
 0x585   :  { %v457_v59 = vsel %vm375_vm10, %v456_v57, -inf }
 0x586   :  { %458 = vmax.xlane.f32.xlu1 %v457_v59  ;;  %v550_v60 = vsel %vm375_vm10, %v549_v58, -inf }
 0x587   :  { %551 = vmax.xlane.f32.xlu0 %v550_v60 }
 0x588   :  { %v637_v62 = vpop.f32.mrf.mxu1 }
 0x589   :  { %v641_v7 = vmul.f32 %v637_v62, %v371_v49 }
 0x58a   :  { %v2344_v63 = vpop.f32.mrf.mxu1 }
 0x58b   :  { %v642_v50 = vadd.f32 %v641_v7, %v455_v48 }
 0x58c   :  { %v823_v1 = vpop.f32.mrf.mxu1 }
 0x58d   :  { %v827_v2 = vmul.f32 %v823_v1, %v371_v49  ;;  %v730_v3 = vpop.f32.mrf.mxu0  ;;  %v643_v5 = vsel %vm375_vm10, %v642_v50, -inf }
 0x58e   :  { %v734_v6 = vmul.f32 %v730_v3, %v371_v49  ;;  %644 = vmax.xlane.f32.xlu0 %v643_v5  ;;  %v2354_v8 = vpop.f32.mrf.mxu1 }
 0x58f   :  { %v2349_v9 = vpop.f32.mrf.mxu0  ;;  %v832_v10 = vadd.f32 %v831_v0, %v827_v2 }
 0x590   :  { %v735_v11 = vadd.f32 %v734_v6, %v455_v48 }
 0x591   :  { %v833_v12 = vsel %vm375_vm10, %v832_v10, -inf }
 0x592   :  { %834 = vmax.xlane.f32.xlu1 %v833_v12  ;;  %v736_v4 = vsel %vm375_vm10, %v735_v11, -inf }
 0x593   :  { %737 = vmax.xlane.f32.xlu0 %v736_v4 }
 0x594   :  { %v920_v14 = vpop.f32.mrf.mxu0 }
 0x595   :  { %v924_v15 = vmul.f32 %v920_v14, %v371_v49 }
 0x596   :  { %v2359_v16 = vpop.f32.mrf.mxu0 }
 0x597   :  { %v925_v17 = vadd.f32 %v924_v15, %v831_v0 }
 0x598   :  { %v1106_v19 = vpop.f32.mrf.mxu0 }
 0x599   :  { %v1110_v20 = vmul.f32 %v1106_v19, %v371_v49  ;;  %v1013_v21 = vpop.f32.mrf.mxu1  ;;  %v926_v22 = vsel %vm375_vm10, %v925_v17, -inf }
 0x59a   :  { %v1017_v23 = vmul.f32 %v1013_v21, %v371_v49  ;;  %927 = vmax.xlane.f32.xlu0 %v926_v22  ;;  %v2369_v26 = vpop.f32.mrf.mxu0 }
 0x59b   :  { %v2364_v27 = vpop.f32.mrf.mxu1  ;;  %v1111_v29 = vadd.f32 %v1110_v20, %v831_v0 }
 0x59c   :  { %v1018_v30 = vadd.f32 %v1017_v23, %v831_v0 }
 0x59d   :  { %v1112_v31 = vsel %vm375_vm10, %v1111_v29, -inf }
 0x59e   :  { %1113 = vmax.xlane.f32.xlu0 %v1112_v31  ;;  %v1019_v32 = vsel %vm375_vm10, %v1018_v30, -inf }
 0x59f   :  { %1020 = vmax.xlane.f32.xlu1 %v1019_v32 }
 0x60f   :  { %v459_v33 = vpop.xlane.xlu1 %458 }
 0x610   :  { %v460_v34 = vsub.f32 %v456_v57, %v459_v33  ;;  %v552_v35 = vpop.xlane.xlu0 %551 }
 0x611   :  { %v553_v37 = vsub.f32 %v549_v58, %v552_v35 }
 0x612   :  { %v461_v38 = vmul.f32 1.442695, %v460_v34 }
 0x613   :  { %v554_v39 = vmul.f32 1.442695, %v553_v37 }
 0x614   :  { %2676 = vpow2.f32 %v461_v38 }
 0x615   :  { %2678 = vpow2.f32 %v554_v39 }
 0x617   :  { %v645_v40 = vpop.xlane.xlu0 %644 }
 0x618   :  { %v646_v41 = vsub.f32 %v642_v50, %v645_v40 }
 0x61a   :  { %v647_v42 = vmul.f32 1.442695, %v646_v41 }
 0x61b   :  { %v835_v43 = vpop.xlane.xlu1 %834 }
 0x61c   :  { %2680 = vpow2.f32 %v647_v42  ;;  %v836_v44 = vsub.f32 %v832_v10, %v835_v43  ;;  %v738_v45 = vpop.xlane.xlu0 %737 }
 0x61d   :  { %v739_v46 = vsub.f32 %v735_v11, %v738_v45 }
 0x61e   :  { %v837_v47 = vmul.f32 1.442695, %v836_v44 }
 0x61f   :  { %v740_v48 = vmul.f32 1.442695, %v739_v46 }
 0x620   :  { %2682 = vpow2.f32 %v837_v47 }
 0x621   :  { %v2677_v49 = vpop.eup %2676  ;;  %2684 = vpow2.f32 %v740_v48 }
 0x622   :  { %v2679_v51 = vpop.eup %2678  ;;  %v463_v52 = vsel %vm375_vm10, %v2677_v49, 0.0 }
 0x623   :  { %464 = vadd.xlane.f32.xlu1 %v463_v52  ;;  %v928_v53 = vpop.xlane.xlu0 %927  ;;  %v556_v54 = vsel %vm375_vm10, %v2679_v51, 0.0 }
 0x624   :  { %v929_v55 = vsub.f32 %v925_v17, %v928_v53  ;;  %557 = vadd.xlane.f32.xlu0 %v556_v54 }
 0x626   :  { %v930_v56 = vmul.f32 1.442695, %v929_v55 }
 0x627   :  { %v1114_v57 = vpop.xlane.xlu0 %1113 }
 0x628   :  { %2686 = vpow2.f32 %v930_v56  ;;  %v1115_v58 = vsub.f32 %v1111_v29, %v1114_v57  ;;  %v1021_v59 = vpop.xlane.xlu1 %1020 }
 0x629   :  { %v2681_v60 = vpop.eup %2680  ;;  %v1022_v61 = vsub.f32 %v1018_v30, %v1021_v59 }
 0x62a   :  { %v1116_v62 = vmul.f32 1.442695, %v1115_v58  ;;  %v649_v7 = vsel %vm375_vm10, %v2681_v60, 0.0 }
 0x62b   :  { %v1023_v63 = vmul.f32 1.442695, %v1022_v61  ;;  %650 = vadd.xlane.f32.xlu1 %v649_v7 }
 0x62c   :  { %2688 = vpow2.f32 %v1116_v62 }
 0x62d   :  { %v2683_v50 = vpop.eup %2682  ;;  %2690 = vpow2.f32 %v1023_v63 }
 0x62e   :  { %v2685_v0 = vpop.eup %2684  ;;  %v839_v1 = vsel %vm375_vm10, %v2683_v50, 0.0 }
 0x62f   :  { %840 = vadd.xlane.f32.xlu1 %v839_v1  ;;  %v742_v2 = vsel %vm375_vm10, %v2685_v0, 0.0 }
 0x630   :  { %743 = vadd.xlane.f32.xlu0 %v742_v2 }
 0x635   :  { %v2687_v3 = vpop.eup %2686 }
 0x636   :  { %v932_v5 = vsel %vm375_vm10, %v2687_v3, 0.0 }
 0x637   :  { %933 = vadd.xlane.f32.xlu0 %v932_v5 }
 0x639   :  { %v2689_v6 = vpop.eup %2688 }
 0x63a   :  { %v2691_v8 = vpop.eup %2690  ;;  %v1118_v9 = vsel %vm375_vm10, %v2689_v6, 0.0 }
 0x63b   :  { %1119 = vadd.xlane.f32.xlu0 %v1118_v9  ;;  %v1025_v10 = vsel %vm375_vm10, %v2691_v8, 0.0 }
 0x63c   :  { %1026 = vadd.xlane.f32.xlu1 %v1025_v10 }
 0x640   :  { %350 = vmax.xlane.f32.xlu1 %v349_v28 }
 0x6ac   :  { %v465_v11 = vpop.xlane.xlu1 %464 }
 0x6ad   :  { %2692 = vrcp.f32 %v465_v11  ;;  %v558_v12 = vpop.xlane.xlu0 %557 }
 0x6ae   :  { %2694 = vrcp.f32 %v558_v12 }
 0x6b4   :  { %v651_v4 = vpop.xlane.xlu1 %650 }
 0x6b5   :  { %2696 = vrcp.f32 %v651_v4 }
 0x6b8   :  { %v841_v14 = vpop.xlane.xlu1 %840 }
 0x6b9   :  { %2698 = vrcp.f32 %v841_v14  ;;  %v744_v15 = vpop.xlane.xlu0 %743 }
 0x6ba   :  { %v2693_v16 = vpop.eup %2692  ;;  %2700 = vrcp.f32 %v744_v15 }
 0x6bb   :  { %v2695_v17 = vpop.eup %2694  ;;  %v468_v19 = vmul.f32 %v2693_v16, %v2677_v49 }
 0x6bc   :  { %v561_v20 = vmul.f32 %v2695_v17, %v2679_v51 }
 0x6bd   :  { %469 = vst.msk [vmem:[#allocation2] sm:$0xff] %vm375_vm10, %v468_v19 }
 0x6be   :  { %562 = vst.msk [vmem:[#allocation2 + $0x8] sm:$0xff] %vm375_vm10, %v561_v20 }
 0x6c0   :  { %v934_v24 = vpop.xlane.xlu0 %933 }
 0x6c1   :  { %2702 = vrcp.f32 %v934_v24 }
 0x6c2   :  { %v2697_v25 = vpop.eup %2696 }
 0x6c3   :  { %v654_v28 = vmul.f32 %v2697_v25, %v2681_v60 }
 0x6c4   :  { %v1120_v21 = vpop.xlane.xlu0 %1119  ;;  %v3182_v48 = vld [vmem:[#allocation2] sm:$0xff] }
 0x6c5   :  { %655 = vst.msk [vmem:[#allocation2 + $0x10] sm:$0xff] %vm375_vm10, %v654_v28  ;;  %2704 = vrcp.f32 %v1120_v21  ;;  %v1027_v22 = vpop.xlane.xlu1 %1026  ;;  %v3174_v44 = vld [vmem:[#allocation2 + $0x8] sm:$0xff]  ;;  %v1133_v56 = vand.u32 2147483647, %v3182_v48 }
 0x6c6   :  { %v2699_v23 = vpop.eup %2698  ;;  %2706 = vrcp.f32 %v1027_v22  ;;  %v1134_v52 = vand.u32 2147483647, %v3174_v44 }
 0x6c7   :  { %v2701_v26 = vpop.eup %2700  ;;  %v844_v27 = vmul.f32 %v2699_v23, %v2683_v50  ;;  %v1141_v1 = vsel %vm375_vm10, %v1133_v56, -inf }
 0x6c8   :  { %v747_v29 = vmul.f32 %v2701_v26, %v2685_v0  ;;  %v1142_v62 = vsel %vm375_vm10, %v1134_v52, -inf }
 0x6c9   :  { %845 = vst.msk [vmem:[#allocation2 + $0x20] sm:$0xff] %vm375_vm10, %v844_v27  ;;  %v351_v30 = vpop.xlane.xlu1 %350 }
 0x6ca   :  { %748 = vst.msk [vmem:[#allocation2 + $0x18] sm:$0xff] %vm375_vm10, %v747_v29  ;;  %v352_v31 = vrot.slane %v351_v30, 4 }
 0x6cc   :  { %v353_v32 = vmax.f32 %v351_v30, %v352_v31  ;;  %v3184_v49 = vld [vmem:[#allocation2 + $0x10] sm:$0xff] }
 0x6cd   :  { %v1135_v57 = vand.u32 2147483647, %v3184_v49 }
 0x6ce   :  { %v2703_v33 = vpop.eup %2702  ;;  %v354_v34 = vrot.slane %v353_v32, 2 }
 0x6cf   :  { %v937_v35 = vmul.f32 %v2703_v33, %v2687_v3  ;;  %v1143_v2 = vsel %vm375_vm10, %v1135_v57, -inf }
 0x6d0   :  { %v355_v37 = vmax.f32 %v353_v32, %v354_v34  ;;  %v3176_v45 = vld [vmem:[#allocation2 + $0x20] sm:$0xff] }
 0x6d1   :  { %938 = vst.msk [vmem:[#allocation2 + $0x28] sm:$0xff] %vm375_vm10, %v937_v35  ;;  %v3178_v46 = vld [vmem:[#allocation2 + $0x18] sm:$0xff]  ;;  %v1137_v53 = vand.u32 2147483647, %v3176_v45 }
 0x6d2   :  { %v2705_v38 = vpop.eup %2704  ;;  %v356_v39 = vrot.slane %v355_v37, 1  ;;  %v1136_v54 = vand.u32 2147483647, %v3178_v46 }
 0x6d3   :  { %v2707_v40 = vpop.eup %2706  ;;  %v1123_v41 = vmul.f32 %v2705_v38, %v2689_v6  ;;  %v1145_v7 = vsel %vm375_vm10, %v1137_v53, -inf }
 0x6d4   :  { %v1030_v42 = vmul.f32 %v2707_v40, %v2691_v8  ;;  %v357_v43 = vmax.f32 %v355_v37, %v356_v39  ;;  %v1144_v63 = vsel %vm375_vm10, %v1136_v54, -inf  ;;  %v1146_v6 = vmax.f32 %v1141_v1, %v1145_v7 }
 0x6d5   :  { %1124 = vst.msk [vmem:[#allocation2 + $0x38] sm:$0xff] %vm375_vm10, %v1123_v41 }
 0x6d6   :  { %1031 = vst.msk [vmem:[#allocation2 + $0x30] sm:$0xff] %vm375_vm10, %v1030_v42 }
 0x6d7   :  { %2492 = vpush %v357_v43 }
 0x6d8   :  { %v3180_v47 = vld [vmem:[#allocation2 + $0x28] sm:$0xff] }
 0x6d9   :  { %v1138_v51 = vand.u32 2147483647, %v3180_v47 }
 0x6db   :  { %v1147_v58 = vsel %vm375_vm10, %v1138_v51, -inf }
 0x6dc   :  { %v3190_v55 = vld [vmem:[#allocation2 + $0x38] sm:$0xff]  ;;  %v1148_v50 = vmax.f32 %v1142_v62, %v1147_v58 }
 0x6dd   :  { %v3195_v59 = vld [vmem:[#allocation2 + $0x30] sm:$0xff]  ;;  %v1140_v60 = vand.u32 2147483647, %v3190_v55 }
 0x6de   :  { %v1139_v61 = vand.u32 2147483647, %v3195_v59  ;;  %v1153_v9 = vmax.f32 %v1146_v6, %v1148_v50 }
 0x6df   :  { %v1151_v0 = vsel %vm375_vm10, %v1140_v60, -inf }
 0x6e0   :  { %v1149_v3 = vsel %vm375_vm10, %v1139_v61, -inf  ;;  %v1152_v5 = vmax.f32 %v1144_v63, %v1151_v0 }
 0x6e1   :  { %v1150_v8 = vmax.f32 %v1143_v2, %v1149_v3 }
 0x6e3   :  { %v1154_v10 = vmax.f32 %v1150_v8, %v1152_v5 }
 0x6e5   :  { %v1155_v11 = vmax.f32 %v1153_v9, %v1154_v10 }
 0x6e7   :  { %1156 = vmax.xlane.f32.xlu0 %v1155_v11 }
 0x708   :  { %s2493_s5 = spop %2492 }
 0x709   :  { %v359_v12 = vstv %s2493_s5 }
 0x70a   :  { %v360_v4 = vmax.f32 %v359_v12, 1e-20 }
 0x70c   :  { %2708 = vrcp.f32 %v360_v4  ;;  %v367_v43 = vmul.f32 0.0078125, %v360_v4 }
 0x719   :  { %v2709_v14 = vpop.eup %2708 }
 0x71a   :  { %v362_v15 = vmul.f32 128.0, %v2709_v14 }
 0x71c   :  { %v363_v16 = vmul.f32 %v362_v15, %v3081_v13  ;;  %v364_v17 = vmul.f32 %v362_v15, %v3084_v18 }
 0x71e   :  { %v2496_v19 = vcvt.f32.s32 %v363_v16  ;;  %v2504_v20 = vcvt.f32.s32 %v364_v17  ;;  %v2494_v25 = vand.u32 2147483647, %v363_v16  ;;  %v2499_v22 = vand.u32 2147483648, %v363_v16 }
 0x71f   :  { %v2507_v27 = vand.u32 2147483648, %v364_v17  ;;  %v2502_v29 = vand.u32 2147483647, %v364_v17 }
 0x720   :  { %v2497_v24 = vcvt.s32.f32 %v2496_v19  ;;  %v2505_v28 = vcvt.s32.f32 %v2504_v20  ;;  %vm2495_vm11 = vcmp.lt.f32.partialorder %v2494_v25, 8388608.0 }
 0x721   :  { %vm2503_vm12 = vcmp.lt.f32.partialorder %v2502_v29, 8388608.0 }
 0x722   :  { %v2498_v21 = vand.u32 2147483647, %v2497_v24  ;;  %v2506_v23 = vand.u32 2147483647, %v2505_v28 }
 0x724   :  { %v2500_v26 = vor.u32 %v2499_v22, %v2498_v21  ;;  %v2508_v31 = vor.u32 %v2507_v27, %v2506_v23 }
 0x726   :  { %v2501_v30 = vsel %vm2495_vm11, %v2500_v26, %v363_v16  ;;  %v2509_v13 = vsel %vm2503_vm12, %v2508_v31, %v364_v17 }
 0x727   :  { %1187 = vrot.lane.b32.xlu1 %v2501_v30, %s2929_s24  ;;  %1264 = vrot.lane.b32.xlu0 %v2501_v30, %s2930_s27 }
 0x72b   :  { %1346 = vrot.lane.b32.xlu1 %v2501_v30, %s2931_s6  ;;  %1588 = vrot.lane.b32.xlu0 %v2509_v13, %s2930_s27 }
 0x72f   :  { %1428 = vrot.lane.b32.xlu1 %v2501_v30, %s2932_s15  ;;  %1750 = vrot.lane.b32.xlu0 %v2509_v13, %s2932_s15 }
 0x733   :  { %1511 = vrot.lane.b32.xlu1 %v2509_v13, %s2929_s24 }
 0x737   :  { %1669 = vrot.lane.b32.xlu1 %v2509_v13, %s2931_s6 }
 0x770   :  { %v1157_v18 = vpop.xlane.xlu0 %1156 }
 0x771   :  { %v1158_v32 = vrot.slane %v1157_v18, 4 }
 0x773   :  { %v1159_v33 = vmax.f32 %v1157_v18, %v1158_v32 }
 0x775   :  { %v1160_v34 = vrot.slane %v1159_v33, 2 }
 0x777   :  { %v1161_v35 = vmax.f32 %v1159_v33, %v1160_v34 }
 0x779   :  { %v1162_v37 = vrot.slane %v1161_v35, 1 }
 0x77b   :  { %v1163_v38 = vmax.f32 %v1161_v35, %v1162_v37 }
 0x77d   :  { %2510 = vpush %v1163_v38 }
 0x799   :  { %v1188_v39 = vpop.permute.xlu1 %1187  ;;  %v1265_v40 = vpop.permute.xlu0 %1264 }
 0x79a   :  { %2371 = vmatpush3.msra.mxu1 %v1188_v39  ;;  %2376 = vmatpush3.msra.mxu0 %v1265_v40 }
 0x79b   :  { %2380 = vmatprep.subr.mxu1 %v2920_v36  ;;  %2385 = vmatprep.subr.mxu0 %v2920_v36 }
 0x79d   :  { %v1347_v60 = vpop.permute.xlu1 %1346  ;;  %v1589_v37 = vpop.permute.xlu0 %1588 }
 0x7a1   :  { %v1429_v10 = vpop.permute.xlu1 %1428 }
 0x7a5   :  { %v1512_v18 = vpop.permute.xlu1 %1511 }
 0x7ae   :  { %s2511_s9 = spop %2510 }
 0x7af   :  { %v1165_v41 = vstv %s2511_s9 }
 0x7b0   :  { %v1166_v42 = vmax.f32 %v1165_v41, 1e-20 }
 0x7b2   :  { %2710 = vrcp.f32 %v1166_v42  ;;  %v1185_v51 = vmul.f32 0.0078125, %v1166_v42 }
 0x7b4   :  { %v3210_v52 = vmul.f32 %v1185_v51, %v367_v43 }
 0x7bf   :  { %v2711_v53 = vpop.eup %2710 }
 0x7c0   :  { %v1168_v54 = vmul.f32 128.0, %v2711_v53 }
 0x7c2   :  { %v1169_v56 = vmul.f32 %v1168_v54, %v3182_v48  ;;  %v1170_v57 = vmul.f32 %v1168_v54, %v3174_v44  ;;  %v3215_v58 = vmul.f32 %v1168_v54, %v3184_v49  ;;  %v3218_v62 = vmul.f32 %v1168_v54, %v3178_v46 }
 0x7c3   :  { %v3222_v0 = vmul.f32 %v1168_v54, %v3176_v45  ;;  %v3225_v48 = vmul.f32 %v1168_v54, %v3180_v47  ;;  %v3228_v44 = vmul.f32 %v1168_v54, %v3195_v59  ;;  %v3231_v46 = vmul.f32 %v1168_v54, %v3190_v55 }
 0x7c4   :  { %v2514_v61 = vcvt.f32.s32 %v1169_v56  ;;  %v2512_v7 = vand.u32 2147483647, %v1169_v56  ;;  %v2522_v63 = vcvt.f32.s32 %v1170_v57  ;;  %v2530_v50 = vcvt.f32.s32 %v3215_v58 }
 0x7c5   :  { %v2520_v2 = vand.u32 2147483647, %v1170_v57  ;;  %v2517_v49 = vand.u32 2147483648, %v1169_v56  ;;  %v2525_v8 = vand.u32 2147483648, %v1170_v57  ;;  %v2528_v9 = vand.u32 2147483647, %v3215_v58 }
 0x7c6   :  { %v2515_v1 = vcvt.s32.f32 %v2514_v61  ;;  %v2523_v3 = vcvt.s32.f32 %v2522_v63  ;;  %v2531_v5 = vcvt.s32.f32 %v2530_v50  ;;  %v2538_v45 = vcvt.f32.s32 %v3218_v62 }
 0x7c7   :  { %vm3235_vm13 = vcmp.lt.f32.partialorder %v2512_v7, 8388608.0  ;;  %v2546_v12 = vcvt.f32.s32 %v3222_v0  ;;  %vm3240_vm14 = vcmp.lt.f32.partialorder %v2520_v2, 8388608.0  ;;  %v2533_v55 = vand.u32 2147483648, %v3215_v58  ;;  %v1670_v7 = vpop.permute.xlu1 %1669 }
 0x7c8   :  { %v2516_v6 = vand.u32 2147483647, %v2515_v1  ;;  %v2524_v47 = vand.u32 2147483647, %v2523_v3  ;;  %v2532_v59 = vand.u32 2147483647, %v2531_v5  ;;  %v2539_v15 = vcvt.s32.f32 %v2538_v45  ;;  %v1751_v1 = vpop.permute.xlu0 %1750 }
 0x7c9   :  { %v2536_v17 = vand.u32 2147483647, %v3218_v62  ;;  %v2541_v19 = vand.u32 2147483648, %v3218_v62  ;;  %v2547_v20 = vcvt.s32.f32 %v2546_v12  ;;  %v2554_v21 = vcvt.f32.s32 %v3225_v48 }
 0x7ca   :  { %v2518_v4 = vor.u32 %v2517_v49, %v2516_v6  ;;  %v2526_v16 = vor.u32 %v2525_v8, %v2524_v47  ;;  %v2534_v25 = vor.u32 %v2533_v55, %v2532_v59  ;;  %v2540_v28 = vand.u32 2147483647, %v2539_v15 }
 0x7cb   :  { %vm3253_vm15 = vcmp.lt.f32.partialorder %v2528_v9, 8388608.0  ;;  %v2544_v26 = vand.u32 2147483647, %v3222_v0  ;;  %v2548_v27 = vand.u32 2147483647, %v2547_v20  ;;  %v2549_v30 = vand.u32 2147483648, %v3222_v0 }
 0x7cc   :  { %v2519_v24 = vsel %vm3235_vm13, %v2518_v4, %v1169_v56  ;;  %v2527_v22 = vsel %vm3240_vm14, %v2526_v16, %v1170_v57  ;;  %v2542_v29 = vor.u32 %v2541_v19, %v2540_v28  ;;  %v2555_v31 = vcvt.s32.f32 %v2554_v21 }
 0x7cd   :  { %2373 = vmatmul.mubr.msk.f32.vlgmr.msra.gmra.mxu1 %vm375_vm10, %v2519_v24  ;;  %2378 = vmatmul.mubr.msk.f32.vlgmr.msra.gmra.mxu0 %vm375_vm10, %v2527_v22  ;;  %v2562_v13 = vcvt.f32.s32 %v3228_v44  ;;  %vm3263_vm2 = vcmp.lt.f32.partialorder %v2536_v17, 8388608.0  ;;  %v2552_v33 = vand.u32 2147483647, %v3225_v48  ;;  %v2557_v34 = vand.u32 2147483648, %v3225_v48 }
 0x7ce   :  { %2381 = vmatpush3.msra.mxu1 %v1347_v60  ;;  %2386 = vmatpush3.msra.mxu0 %v1429_v10  ;;  %v2570_v35 = vcvt.f32.s32 %v3231_v46  ;;  %v2535_v38 = vsel %vm3253_vm15, %v2534_v25, %v3215_v58  ;;  %v2550_v39 = vor.u32 %v2549_v30, %v2548_v27  ;;  %v2556_v40 = vand.u32 2147483647, %v2555_v31  ;;  %v2659_v30 = vld [vmem:[%s3399_s7] sm:$0xff]  }
 0x7cf   :  { %2382 = vmatprep.mubr.msk.f32.mxu1 %vm2921_vm1, %v2920_v36  ;;  %2387 = vmatprep.mubr.msk.f32.mxu0 %vm2921_vm1, %v2920_v36  ;;  %v2563_v41 = vcvt.s32.f32 %v2562_v13  ;;  %v2543_v42 = vsel %vm3263_vm2, %v2542_v29, %v3218_v62  ;;  %v2565_v54 = vand.u32 2147483648, %v3228_v44  ;;  %vm2545_vm3 = vcmp.lt.f32.partialorder %v2544_v26, 8388608.0  ;;  %v2658_v29 = vld [vmem:[%s3399_s7 + $0x8] sm:$0xff]   ;;  %s1920_s7 = sld [smem:[#allocation17]] }
 0x7d0   :  { %2390 = vmatprep.subr.mxu1 %v2920_v36  ;;  %2395 = vmatprep.subr.mxu0 %v2920_v36  ;;  %v2571_v43 = vcvt.s32.f32 %v2570_v35  ;;  %v2558_v51 = vor.u32 %v2557_v34, %v2556_v40  ;;  %v2560_v56 = vand.u32 2147483647, %v3228_v44  ;;  %v2573_v58 = vand.u32 2147483648, %v3231_v46 }
 0x7d1   :  { %2383 = vmatmul.mubr.msk.f32.vlgmr.msra.gmra.mxu1 %vm375_vm10, %v2535_v38  ;;  %2388 = vmatmul.mubr.msk.f32.vlgmr.msra.gmra.mxu0 %vm375_vm10, %v2543_v42  ;;  %v2564_v53 = vand.u32 2147483647, %v2563_v41  ;;  %v2551_v60 = vsel %vm2545_vm3, %v2550_v39, %v3222_v0  ;;  %vm2553_vm4 = vcmp.lt.f32.partialorder %v2552_v33, 8388608.0  ;;  %v2568_v62 = vand.u32 2147483647, %v3231_v46 }
 0x7d2   :  { %2391 = vmatpush3.msra.mxu1 %v1512_v18  ;;  %2396 = vmatpush3.msra.mxu0 %v1589_v37  ;;  %v2572_v57 = vand.u32 2147483647, %v2571_v43  ;;  %v2559_v63 = vsel %vm2553_vm4, %v2558_v51, %v3225_v48  ;;  %vm2561_vm5 = vcmp.lt.f32.partialorder %v2560_v56, 8388608.0  ;;  %vm2090_vm13 = vcmask 523264  }
 0x7d3   :  { %2392 = vmatprep.mubr.msk.f32.mxu1 %vm2921_vm1, %v2920_v36  ;;  %2397 = vmatprep.mubr.msk.f32.mxu0 %vm2921_vm1, %v2920_v36  ;;  %v2566_v61 = vor.u32 %v2565_v54, %v2564_v53  ;;  %vm2569_vm6 = vcmp.lt.f32.partialorder %v2568_v62, 8388608.0 }
 0x7d4   :  { %2400 = vmatprep.subr.mxu1 %v2920_v36  ;;  %2405 = vmatprep.subr.mxu0 %v2920_v36  ;;  %v2574_v50 = vor.u32 %v2573_v58, %v2572_v57 }
 0x7d5   :  { %2393 = vmatmul.mubr.msk.f32.vlgmr.msra.gmra.mxu1 %vm375_vm10, %v2551_v60  ;;  %2398 = vmatmul.mubr.msk.f32.vlgmr.msra.gmra.mxu0 %vm375_vm10, %v2559_v63  ;;  %v2567_v0 = vsel %vm2561_vm5, %v2566_v61, %v3228_v44 }
 0x7d6   :  { %2401 = vmatpush3.msra.mxu1 %v1670_v7  ;;  %2406 = vmatpush3.msra.mxu0 %v1751_v1  ;;  %v2575_v2 = vsel %vm2569_vm6, %v2574_v50, %v3231_v46 }
 0x7d7   :  { %2402 = vmatprep.mubr.msk.f32.mxu1 %vm2921_vm1, %v2920_v36  ;;  %2407 = vmatprep.mubr.msk.f32.mxu0 %vm2921_vm1, %v2920_v36 }
 0x7d8   :  { %2410 = vmatprep.subr.bf16.mxu1 %v2920_v36  ;;  %2418 = vmatprep.subr.bf16.mxu0 %v2920_v36 }
 0x7d9   :  { %2403 = vmatmul.mubr.msk.f32.vlgmr.msra.gmra.mxu1 %vm375_vm10, %v2567_v0  ;;  %2408 = vmatmul.mubr.msk.f32.vlgmr.msra.gmra.mxu0 %vm375_vm10, %v2575_v2  ;;  %v1921_v2 = vstv %s1920_s7 }
 0x7da   :  { %2414 = vmatprep.mubr.msk.bf16.mxu1 %vm2921_vm1, %v2920_v36  ;;  %2422 = vmatprep.mubr.msk.bf16.mxu0 %vm2921_vm1, %v2920_v36 }
 0x7db   :  { %2411 = vmatpush3.bf16.msra.mxu1 %v2658_v29 }
 0x7dc   :  { %2412 = vmatprep.subr.bf16.mxu1 %v2920_v36 }
 0x7df   :  { %2413 = vmatpush3.bf16.msra.mxu1 %v2659_v30 }
 0x7e0   :  { %2426 = vmatprep.subr.bf16.mxu1 %v2920_v36 }
 0x88d   :  { %v1259_v48 = vpop.f32.mrf.mxu1  ;;  %v1336_v44 = vpop.f32.mrf.mxu0 }
 0x88e   :  { %1263 = vst.msk [vmem:[#allocation3] sm:$0xff] %vm375_vm10, %v1259_v48  ;;  %1341 = vrot.lane.b32.xlu1 %v1336_v44, %s2933_s28 }
 0x88f   :  { %v2374_v49 = vpop.f32.mrf.mxu1  ;;  %v2379_v3 = vpop.f32.mrf.mxu0 }
 0x890   :  { %v2261_v49 = vld [vmem:[#allocation14] ss:$0 sm:$0xff] }
 0x891   :  { %v1418_v5 = vpop.f32.mrf.mxu1  ;;  %v1500_v46 = vpop.f32.mrf.mxu0 }
 0x892   :  { %1423 = vrot.lane.b32.xlu1 %v1418_v5, %s2934_s30 }
 0x893   :  { %v2384_v6 = vpop.f32.mrf.mxu1  ;;  %v2389_v8 = vpop.f32.mrf.mxu0 }
 0x894   :  { %v2726_v8 = vld [vmem:[%s3411_s29] sm:$0xff] }
 0x895   :  { %v1583_v9 = vpop.f32.mrf.mxu1  ;;  %v1660_v45 = vpop.f32.mrf.mxu0 }
 0x896   :  { %1587 = vst.msk [vmem:[#allocation3 + $0x8] sm:$0xff] %vm375_vm10, %v1583_v9  ;;  %1505 = vrot.lane.b32.xlu1 %v1500_v46, %s2935_s0  ;;  %1665 = vrot.lane.b32.xlu0 %v1660_v45, %s2933_s28 }
 0x897   :  { %v2394_v10 = vpop.f32.mrf.mxu1  ;;  %v2399_v11 = vpop.f32.mrf.mxu0 }
 0x899   :  { %v1741_v47 = vpop.f32.mrf.mxu1  ;;  %v1822_v59 = vpop.f32.mrf.mxu0 }
 0x89a   :  { %1746 = vrot.lane.b32.xlu0 %v1741_v47, %s2934_s30 }
 0x89b   :  { %v2404_v12 = vpop.f32.mrf.mxu1  ;;  %v2409_v4 = vpop.f32.mrf.mxu0 }
 0x89e   :  { %1827 = vrot.lane.b32.xlu0 %v1822_v59, %s2935_s0  ;;  %v2727_v59 = vld [vmem:[%s3411_s29 + $0x8] sm:$0xff] }
 0x900   :  { %v1342_v14 = vpop.permute.xlu1 %1341 }
 0x901   :  { %1345 = vst.msk [vmem:[#allocation3] sm:$0xff] %vm1344_vm7, %v1342_v14 }
 0x904   :  { %v1424_v55 = vpop.permute.xlu1 %1423 }
 0x905   :  { %1427 = vst.msk [vmem:[#allocation3] sm:$0xff] %vm1426_vm8, %v1424_v55 }
 0x908   :  { %v1506_v15 = vpop.permute.xlu1 %1505  ;;  %v1666_v16 = vpop.permute.xlu0 %1665 }
 0x909   :  { %1509 = vst.msk [vmem:[#allocation3] sm:$0xff] %vm1508_vm9, %v1506_v15 }
 0x90a   :  { %1668 = vst.msk [vmem:[#allocation3 + $0x8] sm:$0xff] %vm1344_vm7, %v1666_v16 }
 0x90c   :  { %v1747_v17 = vpop.permute.xlu0 %1746 }
 0x90d   :  { %1749 = vst.msk [vmem:[#allocation3 + $0x8] sm:$0xff] %vm1426_vm8, %v1747_v17 }
 0x910   :  { %v1828_v19 = vpop.permute.xlu0 %1827  ;;  %v1831_v20 = vld [vmem:[#allocation3] sm:$0xff] }
 0x911   :  { %1830 = vst.msk [vmem:[#allocation3 + $0x8] sm:$0xff] %vm1508_vm9, %v1828_v19  ;;  %v1834_v24 = vmul.f32 %v3210_v52, %v1831_v20 }
 0x913   :  { %v1836_v21 = vand.u32 2147483647, %v1834_v24 }
 0x915   :  { %v1838_v23 = vsel %vm154_vm0, %v1836_v21, -inf }
 0x918   :  { %v1832_v25 = vld [vmem:[#allocation3 + $0x8] sm:$0xff] }
 0x919   :  { %v1835_v28 = vmul.f32 %v3210_v52, %v1832_v25 }
 0x91b   :  { %v1837_v22 = vand.u32 2147483647, %v1835_v28 }
 0x91d   :  { %v1839_v26 = vsel %vm154_vm0, %v1837_v22, -inf }
 0x91e   :  { %v1840_v27 = vmax.f32 %v1838_v23, %v1839_v26 }
 0x920   :  { %1841 = vmax.xlane.f32.xlu1 %v1840_v27 }
 0x9a9   :  { %v1842_v52 = vpop.xlane.xlu1 %1841 }
 0x9aa   :  { %v1843_v31 = vrot.slane %v1842_v52, 4 }
 0x9ac   :  { %v1844_v13 = vmax.f32 %v1842_v52, %v1843_v31  ;;  %v2262_v52 = vld [vmem:[#allocation16] ss:$0 sm:$0xff] }
 0x9ae   :  { %v1845_v18 = vrot.slane %v1844_v13, 2 }
 0x9b0   :  { %v1846_v32 = vmax.f32 %v1844_v13, %v1845_v18  ;;  %v2263_v13 = vld [vmem:[%s3402_s10] ss:$0 sm:$0xff] }
 0x9b2   :  { %v1847_v33 = vrot.slane %v1846_v32, 1 }
 0x9b4   :  { %v1848_v34 = vmax.f32 %v1846_v32, %v1847_v33 }
 0x9b6   :  { %2576 = vpush %v1848_v34 }
 0x9e7   :  { %s2577_s1 = spop %2576 }
 0x9e8   :  { %v1850_v35 = vstv %s2577_s1  ;;  %s2936_s1 = smov [#allocation18]  }
 0x9e9   :  { %v1851_v37 = vmax.f32 %v1850_v35, 1e-20  ;;  %s2212_s7 = sshll.u32 %s2936_s1, 4  ;;  %s2213_s7 = int_to_ptr.vmem [resolvable:$true] %s2212_s7 }
 0x9ea   :  { %s2880_s4 = scalar_lea.vmem %s2213_s7, 256  ;;  %p2885_p13 = scmp.lt.s32.totalorder %s2213_s7, %s2213_s7 }
 0x9eb   :  { %2712 = vrcp.f32 %v1851_v37  ;;  %v1858_v0 = vmul.f32 0.0078125, %v1851_v37  ;;  %p2881_p12 = scmp.ne.s32.totalorder %s2213_s7, %s2880_s4  ;;  %p2886_p0 = scmp.lt.s32.totalorder %s2880_s4, %s2880_s4 }
 0x9ed   :  { %v1922_v48 = vmul.f32 %v1921_v2, %v1858_v0  ;;  %p2887_p1 = por %p2886_p0, %p2885_p13 }
 0x9ef   :  { %p2888_p2 = pnand %p2887_p1, %p2881_p12 }
 0x9f8   :  { %v2713_v38 = vpop.eup %2712 }
 0x9f9   :  { %v1853_v39 = vmul.f32 128.0, %v2713_v38 }
 0x9fb   :  { %v1854_v40 = vmul.f32 %v1853_v39, %v1834_v24  ;;  %v1855_v41 = vmul.f32 %v1853_v39, %v1835_v28 }
 0x9fd   :  { %v2580_v42 = vcvt.f32.s32 %v1854_v40  ;;  %v2588_v43 = vcvt.f32.s32 %v1855_v41  ;;  %v2578_v54 = vand.u32 2147483647, %v1854_v40  ;;  %v2586_v56 = vand.u32 2147483647, %v1855_v41 }
 0x9fe   :  { %v2583_v58 = vand.u32 2147483648, %v1854_v40  ;;  %v2591_v61 = vand.u32 2147483648, %v1855_v41 }
 0x9ff   :  { %v2581_v51 = vcvt.s32.f32 %v2580_v42  ;;  %v2589_v53 = vcvt.s32.f32 %v2588_v43  ;;  %vm2579_vm10 = vcmp.lt.f32.partialorder %v2578_v54, 8388608.0  ;;  %vm2587_vm11 = vcmp.lt.f32.partialorder %v2586_v56, 8388608.0  ;;  %v2660_v43 = vld [vmem:[%s3403_s11 + $0x8] sm:$0xff]  }
 0xa00   :  { %2419 = vmatpush3.bf16.msra.mxu0 %v2660_v43 }
 0xa01   :  { %v2582_v57 = vand.u32 2147483647, %v2581_v51  ;;  %v2590_v60 = vand.u32 2147483647, %v2589_v53  ;;  %v2661_v51 = vld [vmem:[%s3403_s11] sm:$0xff]   ;;  %2420 = vmatprep.subr.bf16.mxu0 %v2920_v36  ;;  %s2267_s11 = sld [smem:[#allocation17 + $0x1]] }
 0xa03   :  { %v2584_v62 = vor.u32 %v2583_v58, %v2582_v57  ;;  %v2592_v7 = vor.u32 %v2591_v61, %v2590_v60 }
 0xa04   :  { %2421 = vmatpush3.bf16.msra.mxu0 %v2661_v51 }
 0xa05   :  { %v2585_v63 = vsel %vm2579_vm10, %v2584_v62, %v1854_v40  ;;  %v2593_v50 = vsel %vm2587_vm11, %v2592_v7, %v1855_v41 }
 0xa06   :  { %v1859_v1 = vpack.c.bf16 %v2593_v50, %v2585_v63 }
 0xa08   :  { %2415 = vmatmul.mubr.msk.bf16.vlgmr.msra.gmra.mxu1 %vm154_vm0, %v1859_v1 }
 0xa09   :  { %2434 = vmatprep.mubr.msk.bf16.mxu1 %vm2921_vm1, %v2920_v36 }
 0xac8   :  { %v1913_v44 = vpop.f32.mrf.mxu1 }
 0xac9   :  { %v1923_v3 = vmul.f32 %v1922_v48, %v1913_v44 }
 0xaca   :  { %v2416_v5 = vpop.f32.mrf.mxu1 }
 0xacb   :  { %v1932_v46 = vadd.f32 %v2261_v49, %v1923_v3 }
 0xacc   :  { %v1916_v6 = vpop.f32.mrf.mxu1 }
 0xacd   :  { %v3332_v9 = vadd.f32 %v2726_v8, %v1932_v46  ;;  %v1924_v45 = vmul.f32 %v1922_v48, %v1916_v6 }
 0xace   :  { %v2417_v10 = vpop.f32.mrf.mxu1 }
 0xacf   :  { %v1933_v11 = vadd.f32 %v2261_v49, %v1924_v45  ;;  %v1938_v47 = vsel %vm154_vm0, %v3332_v9, 0.0 }
 0xad0   :  { %1939 = vadd.xlane.f32.xlu0 %v1938_v47 }
 0xad1   :  { %v3339_v12 = vadd.f32 %v2727_v59, %v1933_v11 }
 0xad3   :  { %v1941_v4 = vsel %vm154_vm0, %v3339_v12, 0.0 }
 0xad4   :  { %1942 = vadd.xlane.f32.xlu0 %v1941_v4 }
 0xb59   :  { %v1940_v14 = vpop.xlane.xlu0 %1939 }
 0xb5a   :  { %v1944_v55 = vmul.f32 0.03125, %v1940_v14 }
 0xb5c   :  { %v1946_v15 = vsub.f32 %v3332_v9, %v1944_v55  ;;  %v2065_v55 = vstv %s2267_s11 }
 0xb5d   :  { %v1943_v16 = vpop.xlane.xlu0 %1942 }
 0xb5e   :  { %v1945_v17 = vmul.f32 0.03125, %v1943_v16  ;;  %v1948_v19 = vmul.f32 %v1946_v15, %v1946_v15 }
 0xb60   :  { %v1947_v20 = vsub.f32 %v3339_v12, %v1945_v17  ;;  %v1950_v24 = vsel %vm154_vm0, %v1948_v19, 0.0  ;;  %v2268_v17 = vld [vmem:[%s3404_s12] ss:$0 sm:$0xff] }
 0xb61   :  { %1951 = vadd.xlane.f32.xlu0 %v1950_v24 }
 0xb62   :  { %v1949_v25 = vmul.f32 %v1947_v20, %v1947_v20 }
 0xb64   :  { %v1953_v28 = vsel %vm154_vm0, %v1949_v25, 0.0 }
 0xb65   :  { %1954 = vadd.xlane.f32.xlu1 %v1953_v28 }
 0xbea   :  { %v1952_v21 = vpop.xlane.xlu0 %1951 }
 0xbeb   :  { %v1956_v22 = vmul.f32 0.03125, %v1952_v21 }
 0xbed   :  { %v1958_v23 = vadd.f32 1e-12, %v1956_v22 }
 0xbee   :  { %v1955_v26 = vpop.xlane.xlu1 %1954 }
 0xbef   :  { %2714 = vrsqrt.f32 %v1958_v23  ;;  %v1957_v27 = vmul.f32 0.03125, %v1955_v26 }
 0xbf1   :  { %v1959_v29 = vadd.f32 1e-12, %v1957_v27 }
 0xbf3   :  { %2716 = vrsqrt.f32 %v1959_v29 }
 0xbfc   :  { %v2715_v30 = vpop.eup %2714 }
 0xbfd   :  { %v1962_v31 = vmul.f32 %v2715_v30, %v1946_v15 }
 0xbff   :  { %v1970_v18 = vmul.f32 %v2262_v52, %v1962_v31 }
 0xc00   :  { %v2717_v32 = vpop.eup %2716 }
 0xc01   :  { %v1963_v33 = vmul.f32 %v2717_v32, %v1947_v20  ;;  %v1978_v34 = vadd.f32 %v2263_v13, %v1970_v18 }
 0xc03   :  { %v1971_v35 = vmul.f32 %v2262_v52, %v1963_v33  ;;  %v1980_v38 = vand.u32 2147483647, %v1978_v34 }
 0xc05   :  { %v1979_v37 = vadd.f32 %v2263_v13, %v1971_v35  ;;  %v1982_v40 = vsel %vm154_vm0, %v1980_v38, -inf }
 0xc07   :  { %v1981_v39 = vand.u32 2147483647, %v1979_v37 }
 0xc09   :  { %v1983_v41 = vsel %vm154_vm0, %v1981_v39, -inf  ;;  %v2662_v39 = vld [vmem:[%s3405_s13 + $0x18] sm:$0xff]  }
 0xc0a   :  { %v1984_v42 = vmax.f32 %v1982_v40, %v1983_v41  ;;  %2427 = vmatpush3.bf16.msra.mxu1 %v2662_v39  ;;  %v2663_v40 = vld [vmem:[%s3405_s13 + $0x10] sm:$0xff]   ;;  %v2664_v41 = vld [vmem:[%s3405_s13 + $0x8] sm:$0xff]  }
 0xc0b   :  { %2428 = vmatprep.subr.bf16.mxu1 %v2920_v36 }
 0xc0c   :  { %1985 = vmax.xlane.f32.xlu0 %v1984_v42  ;;  %v2665_v42 = vld [vmem:[%s3405_s13] sm:$0xff]   ;;  %s2274_s13 = sld [smem:[#allocation17 + $0x2]] }
 0xc0e   :  { %2429 = vmatpush3.bf16.msra.mxu1 %v2663_v40 }
 0xc0f   :  { %2430 = vmatprep.subr.bf16.mxu1 %v2920_v36 }
 0xc12   :  { %2431 = vmatpush3.bf16.msra.mxu1 %v2664_v41 }
 0xc13   :  { %2432 = vmatprep.subr.bf16.mxu1 %v2920_v36 }
 0xc16   :  { %2433 = vmatpush3.bf16.msra.mxu1 %v2665_v42 }
 0xc95   :  { %v1986_v53 = vpop.xlane.xlu0 %1985 }
 0xc96   :  { %v1987_v54 = vrot.slane %v1986_v53, 4 }
 0xc98   :  { %v1988_v56 = vmax.f32 %v1986_v53, %v1987_v54 }
 0xc9a   :  { %v1989_v57 = vrot.slane %v1988_v56, 2 }
 0xc9c   :  { %v1990_v58 = vmax.f32 %v1988_v56, %v1989_v57 }
 0xc9e   :  { %v1991_v60 = vrot.slane %v1990_v58, 1 }
 0xca0   :  { %v1992_v61 = vmax.f32 %v1990_v58, %v1991_v60 }
 0xca2   :  { %2594 = vpush %v1992_v61 }
 0xcd3   :  { %s2595_s3 = spop %2594 }
 0xcd4   :  { %v1994_v62 = vstv %s2595_s3 }
 0xcd5   :  { %v1995_v7 = vmax.f32 %v1994_v62, 1e-20 }
 0xcd7   :  { %2718 = vrcp.f32 %v1995_v7  ;;  %v2002_v14 = vmul.f32 0.0078125, %v1995_v7 }
 0xcd9   :  { %v2066_v15 = vmul.f32 %v2065_v55, %v2002_v14  ;;  %v2275_v55 = vld [vmem:[%s3406_s14] ss:$0 sm:$0xff] }
 0xce4   :  { %v2719_v63 = vpop.eup %2718 }
 0xce5   :  { %v1997_v50 = vmul.f32 128.0, %v2719_v63 }
 0xce7   :  { %v1998_v1 = vmul.f32 %v1997_v50, %v1978_v34  ;;  %v1999_v0 = vmul.f32 %v1997_v50, %v1979_v37 }
 0xce9   :  { %v2598_v2 = vcvt.f32.s32 %v1998_v1  ;;  %v2606_v48 = vcvt.f32.s32 %v1999_v0  ;;  %v2596_v3 = vand.u32 2147483647, %v1998_v1  ;;  %v2604_v5 = vand.u32 2147483647, %v1999_v0 }
 0xcea   :  { %v2601_v6 = vand.u32 2147483648, %v1998_v1  ;;  %v2609_v45 = vand.u32 2147483648, %v1999_v0 }
 0xceb   :  { %v2599_v44 = vcvt.s32.f32 %v2598_v2  ;;  %v2607_v49 = vcvt.s32.f32 %v2606_v48  ;;  %vm2597_vm1 = vcmp.lt.f32.partialorder %v2596_v3, 8388608.0  ;;  %vm2605_vm12 = vcmp.lt.f32.partialorder %v2604_v5, 8388608.0 }
 0xced   :  { %v2600_v46 = vand.u32 2147483647, %v2599_v44  ;;  %v2608_v8 = vand.u32 2147483647, %v2607_v49 }
 0xcef   :  { %v2602_v10 = vor.u32 %v2601_v6, %v2600_v46  ;;  %v2610_v11 = vor.u32 %v2609_v45, %v2608_v8 }
 0xcf1   :  { %v2603_v47 = vsel %vm2597_vm1, %v2602_v10, %v1998_v1  ;;  %v2611_v59 = vsel %vm2605_vm12, %v2610_v11, %v1999_v0 }
 0xcf2   :  { %v2003_v4 = vpack.c.bf16 %v2611_v59, %v2603_v47  ;;  %v2190_v59 = vstv %s2274_s13 }
 0xcf4   :  { %2423 = vmatmul.mubr.msk.bf16.vlgmr.msra.gmra.mxu0 %vm154_vm0, %v2003_v4 }
 0xdb4   :  { %v2057_v16 = vpop.f32.mrf.mxu0 }
 0xdb5   :  { %v2067_v19 = vmul.f32 %v2066_v15, %v2057_v16 }
 0xdb6   :  { %v2424_v20 = vpop.f32.mrf.mxu0 }
 0xdb7   :  { %v2076_v24 = vadd.f32 %v2268_v17, %v2067_v19 }
 0xdb8   :  { %v2060_v25 = vpop.f32.mrf.mxu0 }
 0xdb9   :  { %v2080_v28 = vmul.f32 0.70710677, %v2076_v24  ;;  %v2068_v21 = vmul.f32 %v2066_v15, %v2060_v25  ;;  %v2078_v29 = vmul.f32 0.5, %v2076_v24 }
 0xdba   :  { %v2425_v22 = vpop.f32.mrf.mxu0 }
 0xdbb   :  { %2720 = verf.f32 %v2080_v28  ;;  %v2077_v23 = vadd.f32 %v2268_v17, %v2068_v21 }
 0xdbd   :  { %v2081_v26 = vmul.f32 0.70710677, %v2077_v23  ;;  %v2079_v13 = vmul.f32 0.5, %v2077_v23 }
 0xdbf   :  { %2722 = verf.f32 %v2081_v26 }
 0xdc8   :  { %v2721_v27 = vpop.eup %2720 }
 0xdc9   :  { %v2084_v30 = vadd.f32 1.0, %v2721_v27 }
 0xdcb   :  { %v2086_v52 = vmul.f32 %v2084_v30, %v2078_v29 }
 0xdcc   :  { %v2723_v31 = vpop.eup %2722 }
 0xdcd   :  { %v2085_v18 = vadd.f32 1.0, %v2723_v31  ;;  %v2088_v33 = vand.u32 2147483647, %v2086_v52 }
 0xdcf   :  { %v2087_v32 = vmul.f32 %v2085_v18, %v2079_v13  ;;  %v2091_v35 = vsel %vm2090_vm13, %v2088_v33, -inf }
 0xdd1   :  { %v2089_v34 = vand.u32 2147483647, %v2087_v32 }
 0xdd3   :  { %v2092_v37 = vsel %vm2090_vm13, %v2089_v34, -inf }
 0xdd4   :  { %v2093_v38 = vmax.f32 %v2091_v35, %v2092_v37 }
 0xdd6   :  { %2094 = vmax.xlane.f32.xlu1 %v2093_v38 }
 0xe5f   :  { %v2095_v43 = vpop.xlane.xlu1 %2094 }
 0xe60   :  { %v2096_v51 = vrot.slane %v2095_v43, 4 }
 0xe62   :  { %v2097_v53 = vmax.f32 %v2095_v43, %v2096_v51 }
 0xe64   :  { %v2098_v54 = vrot.slane %v2097_v53, 2 }
 0xe66   :  { %v2099_v56 = vmax.f32 %v2097_v53, %v2098_v54 }
 0xe68   :  { %v2100_v57 = vrot.slane %v2099_v56, 1 }
 0xe6a   :  { %v2101_v58 = vmax.f32 %v2099_v56, %v2100_v57 }
 0xe6c   :  { %2612 = vpush %v2101_v58 }
 0xe9d   :  { %s2613_s17 = spop %2612 }
 0xe9e   :  { %v2103_v60 = vstv %s2613_s17 }
 0xe9f   :  { %v2104_v61 = vmax.f32 %v2103_v60, 1e-20 }
 0xea1   :  { %2724 = vrcp.f32 %v2104_v61  ;;  %v2111_v47 = vmul.f32 0.0078125, %v2104_v61 }
 0xea3   :  { %v2191_v4 = vmul.f32 %v2190_v59, %v2111_v47 }
 0xeae   :  { %v2725_v62 = vpop.eup %2724 }
 0xeaf   :  { %v2106_v7 = vmul.f32 128.0, %v2725_v62 }
 0xeb1   :  { %v2107_v63 = vmul.f32 %v2106_v7, %v2086_v52  ;;  %v2108_v50 = vmul.f32 %v2106_v7, %v2087_v32 }
 0xeb3   :  { %v2616_v1 = vcvt.f32.s32 %v2107_v63  ;;  %v2624_v0 = vcvt.f32.s32 %v2108_v50  ;;  %v2614_v2 = vand.u32 2147483647, %v2107_v63  ;;  %v2619_v49 = vand.u32 2147483648, %v2107_v63 }
 0xeb4   :  { %v2622_v3 = vand.u32 2147483647, %v2108_v50  ;;  %v2627_v46 = vand.u32 2147483648, %v2108_v50 }
 0xeb5   :  { %v2617_v36 = vcvt.s32.f32 %v2616_v1  ;;  %v2625_v48 = vcvt.s32.f32 %v2624_v0  ;;  %vm2615_vm14 = vcmp.lt.f32.partialorder %v2614_v2, 8388608.0 }
 0xeb6   :  { %vm2623_vm15 = vcmp.lt.f32.partialorder %v2622_v3, 8388608.0 }
 0xeb7   :  { %v2618_v44 = vand.u32 2147483647, %v2617_v36  ;;  %v2626_v5 = vand.u32 2147483647, %v2625_v48 }
 0xeb9   :  { %v2620_v6 = vor.u32 %v2619_v49, %v2618_v44  ;;  %v2628_v8 = vor.u32 %v2627_v46, %v2626_v5 }
 0xebb   :  { %v2621_v45 = vsel %vm2615_vm14, %v2620_v6, %v2107_v63  ;;  %v2629_v10 = vsel %vm2623_vm15, %v2628_v8, %v2108_v50 }
 0xebc   :  { %v2112_v11 = vpack.c.bf16 %v2629_v10, %v2621_v45 }
 0xebe   :  { %2435 = vmatmul.mubr.msk.bf16.vlgmr.msra.gmra.mxu1 %vm2090_vm13, %v2112_v11 }
 0xf7e   :  { %v2182_v14 = vpop.f32.mrf.mxu1 }
 0xf7f   :  { %v2192_v15 = vmul.f32 %v2191_v4, %v2182_v14 }
 0xf80   :  { %v2436_v16 = vpop.f32.mrf.mxu1 }
 0xf81   :  { %v2201_v17 = vadd.f32 %v2275_v55, %v2192_v15 }
 0xf82   :  { %v2185_v19 = vpop.f32.mrf.mxu1 }
 0xf83   :  { %v2203_v20 = vadd.f32 %v2201_v17, %v3332_v9  ;;  %v2193_v24 = vmul.f32 %v2191_v4, %v2185_v19 }
 0xf84   :  { %v2437_v25 = vpop.f32.mrf.mxu1 }
 0xf85   :  { %2205 = vst.msk [vmem:[#allocation18] sm:$0xff] %vm154_vm0, %v2203_v20  ;;  %v2202_v28 = vadd.f32 %v2275_v55, %v2193_v24 }
 0xf87   :  { %v2204_v21 = vadd.f32 %v2202_v28, %v3339_v12 }
 0xf89   :  { %2206 = vst.msk [vmem:[#allocation18 + $0x8] sm:$0xff] %vm154_vm0, %v2204_v21 }
 0xf8a   :  { %2891 = shalt.err (!%p2888_p2)
}
 0xf8b   :  { %s2937_s14 = smov 128  }
 0xf8c   :  { %2218 = dma.vmem_to_hbm [thread:$0]  %s2213_s7, 256, %s3408_s16, [#allocation6], %s2937_s14, %s2937_s14, %s2933_s28  }
 0xf8d   :  { %2910 = dma.done.wait [#allocation6], 256  }
 0xf8e   :  { %2911 = vsyncadd [#allocation6], 4294967040 }
 0xf8f   :  { %2222 = vsyncpa [#allocation5], 1 }
 0xf90   :  { %2223 = vsyncpa [#allocation9], 1 }
 0xf91   :  { %2224 = vsyncpa [#allocation12], 1 }
 0xf92   :  { %2225 = vsyncpa [#allocation15], 1 }
 0xf93   :  { %2226 = vsyncpa [#allocation6], 1 }
 0xf94   :  { %2227 = vsyncpa [#allocation7], 1 }

</bundles_post_ra>
